<compile_context>
chip_gen: v6e
topology: v6e:2x2x1
jax: 0.10.0
libtpu: 0.0.40
codegen_flags: <defaults>
</compile_context>

<pallas_src>
import functools

import jax
import jax.numpy as jnp
from jax.experimental import pallas as pl
from jax.experimental.pallas import tpu as pltpu


# ---------------------------------------------------------------------------
# Kernel
# ---------------------------------------------------------------------------
def _decoder_kernel(k_steps, hidden,
                    x_ref,        # (N, P)   node features, cols >= in_f are zero
                    nb0_ref,      # (1, H)   readout layer-0 bias with z-term folded in
                    w0ci_ref,     # (P, 2H)  fused cur|inn layer-0 weight (rows >= in_f zero)
                    wslab_ref,    # (10*H, P) weight slab, each (H,P)=(128,128) entry
                    bslab_ref,    # (10, 2H) bias slab (row 0 is the fused 2H-wide bias)
                    out_ref):     # (N, P)   sigmoid slab, lane 0 is the real output
    H = hidden
    n = x_ref.shape[0]
    inv_n = 1.0 / float(n)
    dot = functools.partial(jnp.dot, preferred_element_type=jnp.float32)

    # ---- hoist all weight loads / bias broadcasts out of the unrolled k-loop ----
    def w(i):                         # static slice: zero runtime cost
        return wslab_ref[i * H:(i + 1) * H, :]

    def b(i):
        return bslab_ref[i:i + 1, :H]

    w0ci = w0ci_ref[...]              # (P, 2H)
    cw1, cw2 = w(0), w(1)
    iw1, iw2 = w(2), w(3)
    fw0, fw1, fw2 = w(4), w(5), w(6)
    nw0x, nw1, nw2 = w(7), w(8), w(9)

    # biases used inside the k-loop: pre-broadcast once to (N, width)
    b0ci = jnp.broadcast_to(bslab_ref[0:1, :], (n, 2 * H))
    cb1, cb2 = jnp.broadcast_to(b(1), (n, H)), jnp.broadcast_to(b(2), (n, H))
    ib1, ib2 = jnp.broadcast_to(b(3), (n, H)), jnp.broadcast_to(b(4), (n, H))
    fb0, fb1, fb2 = (jnp.broadcast_to(b(5), (n, H)),
                     jnp.broadcast_to(b(6), (n, H)),
                     jnp.broadcast_to(b(7), (n, H)))
    nb1, nb2 = b(8), b(9)
    nb0 = nb0_ref[...]                # already contains z @ W0_z + b0

    x = x_ref[...]                    # (N, P) f32
    for _ in range(k_steps):          # small compile-time unroll (k = 3)
        # fused layer-0: current_update & in_update consume the same x
        h01 = jnp.maximum(dot(x, w0ci) + b0ci, 0.0)                     # (N, 2H)
        hc, hi = h01[:, :H], h01[:, H:]
        cur = dot(jnp.maximum(dot(hc, cw1) + cb1, 0.0), cw2) + cb2      # (N, P)
        inn = dot(jnp.maximum(dot(hi, iw1) + ib1, 0.0), iw2) + ib2      # (N, P)
        tot = jnp.sum(inn, axis=0, keepdims=True)                       # (1, P)
        avg = (cur + (tot - inn)) * inv_n                               # (N, P)
        h = jnp.maximum(dot(avg, fw0) + fb0, 0.0)
        h = jnp.maximum(dot(h, fw1) + fb1, 0.0)
        x = dot(h, fw2) + fb2                                           # (N, P)

    # readout: cat([x, z], 1) @ W0 + b0 == x @ W0_x + (z @ W0_z + b0)  (z-term precomputed)
    h = jnp.maximum(dot(x, nw0x) + nb0, 0.0)
    # TODO(synk): nn.Dropout(p=0.5) treated as identity (eval-mode semantics); training
    #             parity would need pltpu.prng_seed + pltpu.prng_random_bits masks.
    h = jnp.maximum(dot(h, nw1) + nb1, 0.0)
    logits = dot(h, nw2) + nb2                                          # (N, P), lane 0 real
    out_ref[...] = jax.nn.sigmoid(logits)                               # lane-dense full-tile store


# ---------------------------------------------------------------------------
# Parameter packing (done once, outside the kernel)
# ---------------------------------------------------------------------------
def _pad_to(a, rows, cols):
    r, c = a.shape
    return jnp.pad(a, ((0, rows - r), (0, cols - c)))


def pack_params(params, hidden=128, pad=128):
    """Pack the 25 unpadded params into 3 slabs (+ the z-path pieces kept separate)."""
    (cw0, cb0, cw1, cb1, cw2, cb2,
     iw0, ib0, iw1, ib1, iw2, ib2,
     fw0, fb0, fw1, fb1, fw2, fb2,
     nw0x, nw0z, nb0, nw1, nb1, nw2, nb2) = params
    H, P = hidden, pad
    assert H == 128 and P >= max(cw0.shape[0], fw0.shape[0])

    # fused layer-0 weight/bias for current_update | in_update (shared input x)
    w0ci = _pad_to(jnp.concatenate([cw0, iw0], axis=1), P, 2 * H)        # (P, 2H)
    b0ci = jnp.concatenate([cb0, ib0], axis=1)                           # (1, 2H)

    # (128,128) weight slab, sublane-stacked; padding with zeros keeps math exact
    wslab = jnp.concatenate([
        _pad_to(cw1, H, P), _pad_to(cw2, H, P),
        _pad_to(iw1, H, P), _pad_to(iw2, H, P),
        _pad_to(fw0, P, H), _pad_to(fw1, H, P), _pad_to(fw2, H, P),
        _pad_to(nw0x, P, H), _pad_to(nw1, H, P), _pad_to(nw2, H, P),
    ], axis=0)                                                           # (10*H, P)

    def brow(bb):
        return _pad_to(bb, 1, 2 * H)

    bslab = jnp.concatenate([brow(b0ci), brow(cb1), brow(cb2), brow(ib1), brow(ib2),
                             brow(fb0), brow(fb1), brow(fb2), brow(nb1), brow(nb2)],
                            axis=0)                                      # (10, 2H)
    return w0ci, wslab, bslab, nw0z, nb0


# ---------------------------------------------------------------------------
# Wrapper
# ---------------------------------------------------------------------------
def vae_decoder_pallas(vertex, z, packed, k_steps=3, hidden=128, pad=128):
    """vertex: (N, in_f) f32, z: (dim_z,) f32, packed: output of pack_params."""
    w0ci, wslab, bslab, nw0z, nb0 = packed
    n, in_f = vertex.shape
    H, P = hidden, pad

    # zero-pad node features to the lane-padded width used by the packed weights
    x0 = jnp.pad(vertex.astype(jnp.float32), ((0, 0), (0, P - in_f)))
    # fold the (constant-per-call) z contribution into the readout layer-0 bias
    nb0_eff = (jnp.dot(z.reshape(1, -1).astype(jnp.float32), nw0z,
                       precision=jax.lax.Precision.HIGHEST) + nb0)       # (1, H)

    flops_step = 2 * n * (P * 2 * H                      # fused layer 0 (cur|inn)
                          + 2 * (H * H + H * P)          # cur & inn layers 1,2
                          + P * H + H * H + H * P)       # fin_update
    flops = k_steps * flops_step + 2 * n * (P * H + H * H + H * P)       # + readout
    bytes_accessed = 4 * (x0.size + nb0_eff.size + w0ci.size
                          + wslab.size + bslab.size + n * P)

    kernel = functools.partial(_decoder_kernel, k_steps, H)
    out = pl.pallas_call(
        kernel,
        out_shape=jax.ShapeDtypeStruct((n, P), jnp.float32),
        in_specs=[pl.BlockSpec(memory_space=pltpu.MemorySpace.VMEM)] * 5,
        out_specs=pl.BlockSpec(memory_space=pltpu.MemorySpace.VMEM),
        cost_estimate=pl.CostEstimate(flops=flops,
                                      transcendentals=n * P,
                                      bytes_accessed=bytes_accessed),
    )(x0, nb0_eff, w0ci, wslab, bslab)
    return out[:, 0]     # (N,) -- matches torch's cat of squeezed per-node sigmoids


# ---------------------------------------------------------------------------
# Deterministic parameter construction (mirrors init_weights: xavier_uniform with
# relu gain, bias = 0.01). Weights stored as (in, out)  (transpose of torch).
# ---------------------------------------------------------------------------
def _xavier_relu(key, fan_in, fan_out):
    gain = 2.0 ** 0.5
    a = gain * (6.0 / (fan_in + fan_out)) ** 0.5
    return jax.random.uniform(key, (fan_in, fan_out), jnp.float32, -a, a)


def _linear_params(key, fan_in, fan_out):
    w = _xavier_relu(key, fan_in, fan_out)
    b = jnp.full((1, fan_out), 0.01, jnp.float32)
    return w, b


def build_params(key, in_f, mid_f, dim_z, hidden=128):
    keys = jax.random.split(key, 12)
    p = []
    for i, (fi, fo) in enumerate([(in_f, hidden), (hidden, hidden), (hidden, mid_f)]):
        w, b = _linear_params(keys[i], fi, fo); p += [w, b]              # current_update
    for i, (fi, fo) in enumerate([(in_f, hidden), (hidden, hidden), (hidden, mid_f)]):
        w, b = _linear_params(keys[3 + i], fi, fo); p += [w, b]          # in_update
    for i, (fi, fo) in enumerate([(mid_f, hidden), (hidden, hidden), (hidden, in_f)]):
        w, b = _linear_params(keys[6 + i], fi, fo); p += [w, b]          # fin_update
    w0, b0 = _linear_params(keys[9], in_f + dim_z, hidden)               # readout
    w1, b1 = _linear_params(keys[10], hidden, hidden)
    w2, b2 = _linear_params(keys[11], hidden, 1)
    p += [w0[:in_f, :], w0[in_f:, :], b0, w1, b1, w2, b2]                # split W0 x/z
    return p


# ---------------------------------------------------------------------------
# Pure-JAX reference (follows the torch loop structure literally)
# ---------------------------------------------------------------------------
def reference_forward(vertex, z, params, k_steps, in_f):
    (cw0, cb0, cw1, cb1, cw2, cb2,
     iw0, ib0, iw1, ib1, iw2, ib2,
     fw0, fb0, fw1, fb1, fw2, fb2,
     nw0x, nw0z, nb0, nw1, nb1, nw2, nb2) = params

    def mlp(x, w0, b0, w1, b1, w2, b2):
        x = jnp.maximum(x @ w0 + b0, 0.0)
        x = jnp.maximum(x @ w1 + b1, 0.0)
        return x @ w2 + b2

    n = vertex.shape[0]
    x = [vertex[i:i + 1] for i in range(n)]
    z2 = z.reshape(1, -1)
    for _ in range(k_steps):
        x2 = []
        for i in range(n):
            new_x = []
            for j in range(n):
                if i == j:
                    new_x.append(mlp(x[j], cw0, cb0, cw1, cb1, cw2, cb2))
                else:
                    new_x.append(mlp(x[j], iw0, ib0, iw1, ib1, iw2, ib2))
            avg = sum(new_x) / n
            x2.append(mlp(avg, fw0, fb0, fw1, fb1, fw2, fb2))
        x = x2
    ys = []
    nw0 = jnp.concatenate([nw0x, nw0z], axis=0)
    for xi in x:
        t = jnp.concatenate([xi, z2], axis=1)
        t = jnp.maximum(t @ nw0 + nb0, 0.0)      # dropout = identity (eval)
        t = jnp.maximum(t @ nw1 + nb1, 0.0)
        ys.append(jax.nn.sigmoid(t @ nw2 + nb2)[0])
    return jnp.concatenate(ys, axis=0)


# ---------------------------------------------------------------------------
if __name__ == "__main__":
    N, IN_F, MID_F, DIM_Z, K, HID = 8, 16, 32, 16, 3, 128

    key = jax.random.PRNGKey(0)
    k_param, k_x, k_z = jax.random.split(key, 3)

    vertex = jax.random.normal(k_x, (N, IN_F), jnp.float32)
    z = jax.random.normal(k_z, (DIM_Z,), jnp.float32)
    params = build_params(k_param, IN_F, MID_F, DIM_Z, HID)
    packed = pack_params(params, hidden=HID, pad=128)    # packed once, 5 kernel inputs

    fwd = jax.jit(functools.partial(vae_decoder_pallas, k_steps=K, hidden=HID, pad=128))
    out = jax.block_until_ready(fwd(vertex, z, packed))

    ref = reference_forward(vertex, z, params, K, IN_F)
    assert out.shape == (N,), out.shape
    assert jnp.allclose(out, ref, atol=1e-4, rtol=1e-4), (out, ref)

    print("KERNEL_OK")
</pallas_src>

<mosaic_0001>
module attributes {stable_mosaic.version = 11 : i64} {
  func.func @_decoder_kernel(%arg0: memref<8x128xf32, #tpu.memory_space<vmem>>, %arg1: memref<1x128xf32, #tpu.memory_space<vmem>>, %arg2: memref<128x256xf32, #tpu.memory_space<vmem>>, %arg3: memref<1280x128xf32, #tpu.memory_space<vmem>>, %arg4: memref<10x256xf32, #tpu.memory_space<vmem>>, %arg5: memref<8x128xf32, #tpu.memory_space<vmem>>) attributes {dimension_semantics = [], scalar_prefetch = 0 : i64, scratch_operands = 0 : i64, tpu.core_type = #tpu.core_type<tc>} {
    %c0 = arith.constant 0 : index
    %c0_0 = arith.constant 0 : index
    %0 = vector.load %arg2[%c0, %c0_0] : memref<128x256xf32, #tpu.memory_space<vmem>>, vector<128x256xf32>
    %c0_1 = arith.constant 0 : index
    %c0_2 = arith.constant 0 : index
    %1 = vector.load %arg3[%c0_1, %c0_2] : memref<1280x128xf32, #tpu.memory_space<vmem>>, vector<128x128xf32>
    %c128 = arith.constant 128 : index
    %c0_3 = arith.constant 0 : index
    %2 = vector.load %arg3[%c128, %c0_3] : memref<1280x128xf32, #tpu.memory_space<vmem>>, vector<128x128xf32>
    %c256 = arith.constant 256 : index
    %c0_4 = arith.constant 0 : index
    %3 = vector.load %arg3[%c256, %c0_4] : memref<1280x128xf32, #tpu.memory_space<vmem>>, vector<128x128xf32>
    %c384 = arith.constant 384 : index
    %c0_5 = arith.constant 0 : index
    %4 = vector.load %arg3[%c384, %c0_5] : memref<1280x128xf32, #tpu.memory_space<vmem>>, vector<128x128xf32>
    %c512 = arith.constant 512 : index
    %c0_6 = arith.constant 0 : index
    %5 = vector.load %arg3[%c512, %c0_6] : memref<1280x128xf32, #tpu.memory_space<vmem>>, vector<128x128xf32>
    %c640 = arith.constant 640 : index
    %c0_7 = arith.constant 0 : index
    %6 = vector.load %arg3[%c640, %c0_7] : memref<1280x128xf32, #tpu.memory_space<vmem>>, vector<128x128xf32>
    %c768 = arith.constant 768 : index
    %c0_8 = arith.constant 0 : index
    %7 = vector.load %arg3[%c768, %c0_8] : memref<1280x128xf32, #tpu.memory_space<vmem>>, vector<128x128xf32>
    %c896 = arith.constant 896 : index
    %c0_9 = arith.constant 0 : index
    %8 = vector.load %arg3[%c896, %c0_9] : memref<1280x128xf32, #tpu.memory_space<vmem>>, vector<128x128xf32>
    %c1024 = arith.constant 1024 : index
    %c0_10 = arith.constant 0 : index
    %9 = vector.load %arg3[%c1024, %c0_10] : memref<1280x128xf32, #tpu.memory_space<vmem>>, vector<128x128xf32>
    %c1152 = arith.constant 1152 : index
    %c0_11 = arith.constant 0 : index
    %10 = vector.load %arg3[%c1152, %c0_11] : memref<1280x128xf32, #tpu.memory_space<vmem>>, vector<128x128xf32>
    %c0_12 = arith.constant 0 : index
    %c0_13 = arith.constant 0 : index
    %11 = vector.load %arg4[%c0_12, %c0_13] : memref<10x256xf32, #tpu.memory_space<vmem>>, vector<1x256xf32>
    %12 = vector.shape_cast %11 : vector<1x256xf32> to vector<1x256xf32>
    %13 = vector.broadcast %12 : vector<1x256xf32> to vector<8x256xf32>
    %c1 = arith.constant 1 : index
    %c0_14 = arith.constant 0 : index
    %14 = vector.load %arg4[%c1, %c0_14] : memref<10x256xf32, #tpu.memory_space<vmem>>, vector<1x128xf32>
    %15 = vector.shape_cast %14 : vector<1x128xf32> to vector<1x128xf32>
    %16 = vector.broadcast %15 : vector<1x128xf32> to vector<8x128xf32>
    %c2 = arith.constant 2 : index
    %c0_15 = arith.constant 0 : index
    %17 = vector.load %arg4[%c2, %c0_15] : memref<10x256xf32, #tpu.memory_space<vmem>>, vector<1x128xf32>
    %18 = vector.shape_cast %17 : vector<1x128xf32> to vector<1x128xf32>
    %19 = vector.broadcast %18 : vector<1x128xf32> to vector<8x128xf32>
    %c3 = arith.constant 3 : index
    %c0_16 = arith.constant 0 : index
    %20 = vector.load %arg4[%c3, %c0_16] : memref<10x256xf32, #tpu.memory_space<vmem>>, vector<1x128xf32>
    %21 = vector.shape_cast %20 : vector<1x128xf32> to vector<1x128xf32>
    %22 = vector.broadcast %21 : vector<1x128xf32> to vector<8x128xf32>
    %c4 = arith.constant 4 : index
    %c0_17 = arith.constant 0 : index
    %23 = vector.load %arg4[%c4, %c0_17] : memref<10x256xf32, #tpu.memory_space<vmem>>, vector<1x128xf32>
    %24 = vector.shape_cast %23 : vector<1x128xf32> to vector<1x128xf32>
    %25 = vector.broadcast %24 : vector<1x128xf32> to vector<8x128xf32>
    %c5 = arith.constant 5 : index
    %c0_18 = arith.constant 0 : index
    %26 = vector.load %arg4[%c5, %c0_18] : memref<10x256xf32, #tpu.memory_space<vmem>>, vector<1x128xf32>
    %27 = vector.shape_cast %26 : vector<1x128xf32> to vector<1x128xf32>
    %28 = vector.broadcast %27 : vector<1x128xf32> to vector<8x128xf32>
    %c6 = arith.constant 6 : index
    %c0_19 = arith.constant 0 : index
    %29 = vector.load %arg4[%c6, %c0_19] : memref<10x256xf32, #tpu.memory_space<vmem>>, vector<1x128xf32>
    %30 = vector.shape_cast %29 : vector<1x128xf32> to vector<1x128xf32>
    %31 = vector.broadcast %30 : vector<1x128xf32> to vector<8x128xf32>
    %c7 = arith.constant 7 : index
    %c0_20 = arith.constant 0 : index
    %32 = vector.load %arg4[%c7, %c0_20] : memref<10x256xf32, #tpu.memory_space<vmem>>, vector<1x128xf32>
    %33 = vector.shape_cast %32 : vector<1x128xf32> to vector<1x128xf32>
    %34 = vector.broadcast %33 : vector<1x128xf32> to vector<8x128xf32>
    %c8 = arith.constant 8 : index
    %c0_21 = arith.constant 0 : index
    %35 = vector.load %arg4[%c8, %c0_21] : memref<10x256xf32, #tpu.memory_space<vmem>>, vector<1x128xf32>
    %c9 = arith.constant 9 : index
    %c0_22 = arith.constant 0 : index
    %36 = vector.load %arg4[%c9, %c0_22] : memref<10x256xf32, #tpu.memory_space<vmem>>, vector<1x128xf32>
    %c0_23 = arith.constant 0 : index
    %c0_24 = arith.constant 0 : index
    %37 = vector.load %arg1[%c0_23, %c0_24] : memref<1x128xf32, #tpu.memory_space<vmem>>, vector<1x128xf32>
    %c0_25 = arith.constant 0 : index
    %c0_26 = arith.constant 0 : index
    %38 = vector.load %arg0[%c0_25, %c0_26] : memref<8x128xf32, #tpu.memory_space<vmem>>, vector<8x128xf32>
    %cst = arith.constant dense<0.000000e+00> : vector<8x256xf32>
    %39 = tpu.matmul %38, %0, %cst {dimension_numbers = #tpu.dot_dimension_numbers<[1], [0], [0], [1], [0, 0, 1, 1], [], []>} : vector<8x128xf32>, vector<128x256xf32>, vector<8x256xf32> -> vector<8x256xf32>
    %40 = arith.addf %39, %13 : vector<8x256xf32>
    %cst_27 = arith.constant 0.000000e+00 : f32
    %41 = vector.broadcast %cst_27 : f32 to vector<8x256xf32>
    %42 = arith.maximumf %40, %41 : vector<8x256xf32>
    %43 = vector.extract_strided_slice %42 {offsets = [0, 0], sizes = [8, 128], strides = [1, 1]} : vector<8x256xf32> to vector<8x128xf32>
    %44 = vector.extract_strided_slice %42 {offsets = [0, 128], sizes = [8, 128], strides = [1, 1]} : vector<8x256xf32> to vector<8x128xf32>
    %cst_28 = arith.constant dense<0.000000e+00> : vector<8x128xf32>
    %45 = tpu.matmul %43, %1, %cst_28 {dimension_numbers = #tpu.dot_dimension_numbers<[1], [0], [0], [1], [0, 0, 1, 1], [], []>} : vector<8x128xf32>, vector<128x128xf32>, vector<8x128xf32> -> vector<8x128xf32>
    %46 = arith.addf %45, %16 : vector<8x128xf32>
    %cst_29 = arith.constant 0.000000e+00 : f32
    %47 = vector.broadcast %cst_29 : f32 to vector<8x128xf32>
    %48 = arith.maximumf %46, %47 : vector<8x128xf32>
    %cst_30 = arith.constant dense<0.000000e+00> : vector<8x128xf32>
    %49 = tpu.matmul %48, %2, %cst_30 {dimension_numbers = #tpu.dot_dimension_numbers<[1], [0], [0], [1], [0, 0, 1, 1], [], []>} : vector<8x128xf32>, vector<128x128xf32>, vector<8x128xf32> -> vector<8x128xf32>
    %50 = arith.addf %49, %19 : vector<8x128xf32>
    %cst_31 = arith.constant dense<0.000000e+00> : vector<8x128xf32>
    %51 = tpu.matmul %44, %3, %cst_31 {dimension_numbers = #tpu.dot_dimension_numbers<[1], [0], [0], [1], [0, 0, 1, 1], [], []>} : vector<8x128xf32>, vector<128x128xf32>, vector<8x128xf32> -> vector<8x128xf32>
    %52 = arith.addf %51, %22 : vector<8x128xf32>
    %cst_32 = arith.constant 0.000000e+00 : f32
    %53 = vector.broadcast %cst_32 : f32 to vector<8x128xf32>
    %54 = arith.maximumf %52, %53 : vector<8x128xf32>
    %cst_33 = arith.constant dense<0.000000e+00> : vector<8x128xf32>
    %55 = tpu.matmul %54, %4, %cst_33 {dimension_numbers = #tpu.dot_dimension_numbers<[1], [0], [0], [1], [0, 0, 1, 1], [], []>} : vector<8x128xf32>, vector<128x128xf32>, vector<8x128xf32> -> vector<8x128xf32>
    %56 = arith.addf %55, %25 : vector<8x128xf32>
    %cst_34 = arith.constant dense<0.000000e+00> : vector<128xf32>
    %57 = vector.multi_reduction <add>, %56, %cst_34 [0] : vector<8x128xf32> to vector<128xf32>
    %58 = vector.shape_cast %57 : vector<128xf32> to vector<1x128xf32>
    %59 = vector.broadcast %58 : vector<1x128xf32> to vector<8x128xf32>
    %60 = arith.subf %59, %56 : vector<8x128xf32>
    %61 = arith.addf %50, %60 : vector<8x128xf32>
    %cst_35 = arith.constant 1.250000e-01 : f32
    %62 = vector.broadcast %cst_35 : f32 to vector<8x128xf32>
    %63 = arith.mulf %61, %62 : vector<8x128xf32>
    %cst_36 = arith.constant dense<0.000000e+00> : vector<8x128xf32>
    %64 = tpu.matmul %63, %5, %cst_36 {dimension_numbers = #tpu.dot_dimension_numbers<[1], [0], [0], [1], [0, 0, 1, 1], [], []>} : vector<8x128xf32>, vector<128x128xf32>, vector<8x128xf32> -> vector<8x128xf32>
    %65 = arith.addf %64, %28 : vector<8x128xf32>
    %cst_37 = arith.constant 0.000000e+00 : f32
    %66 = vector.broadcast %cst_37 : f32 to vector<8x128xf32>
    %67 = arith.maximumf %65, %66 : vector<8x128xf32>
    %cst_38 = arith.constant dense<0.000000e+00> : vector<8x128xf32>
    %68 = tpu.matmul %67, %6, %cst_38 {dimension_numbers = #tpu.dot_dimension_numbers<[1], [0], [0], [1], [0, 0, 1, 1], [], []>} : vector<8x128xf32>, vector<128x128xf32>, vector<8x128xf32> -> vector<8x128xf32>
    %69 = arith.addf %68, %31 : vector<8x128xf32>
    %cst_39 = arith.constant 0.000000e+00 : f32
    %70 = vector.broadcast %cst_39 : f32 to vector<8x128xf32>
    %71 = arith.maximumf %69, %70 : vector<8x128xf32>
    %cst_40 = arith.constant dense<0.000000e+00> : vector<8x128xf32>
    %72 = tpu.matmul %71, %7, %cst_40 {dimension_numbers = #tpu.dot_dimension_numbers<[1], [0], [0], [1], [0, 0, 1, 1], [], []>} : vector<8x128xf32>, vector<128x128xf32>, vector<8x128xf32> -> vector<8x128xf32>
    %73 = arith.addf %72, %34 : vector<8x128xf32>
    %cst_41 = arith.constant dense<0.000000e+00> : vector<8x256xf32>
    %74 = tpu.matmul %73, %0, %cst_41 {dimension_numbers = #tpu.dot_dimension_numbers<[1], [0], [0], [1], [0, 0, 1, 1], [], []>} : vector<8x128xf32>, vector<128x256xf32>, vector<8x256xf32> -> vector<8x256xf32>
    %75 = arith.addf %74, %13 : vector<8x256xf32>
    %cst_42 = arith.constant 0.000000e+00 : f32
    %76 = vector.broadcast %cst_42 : f32 to vector<8x256xf32>
    %77 = arith.maximumf %75, %76 : vector<8x256xf32>
    %78 = vector.extract_strided_slice %77 {offsets = [0, 0], sizes = [8, 128], strides = [1, 1]} : vector<8x256xf32> to vector<8x128xf32>
    %79 = vector.extract_strided_slice %77 {offsets = [0, 128], sizes = [8, 128], strides = [1, 1]} : vector<8x256xf32> to vector<8x128xf32>
    %cst_43 = arith.constant dense<0.000000e+00> : vector<8x128xf32>
    %80 = tpu.matmul %78, %1, %cst_43 {dimension_numbers = #tpu.dot_dimension_numbers<[1], [0], [0], [1], [0, 0, 1, 1], [], []>} : vector<8x128xf32>, vector<128x128xf32>, vector<8x128xf32> -> vector<8x128xf32>
    %81 = arith.addf %80, %16 : vector<8x128xf32>
    %cst_44 = arith.constant 0.000000e+00 : f32
    %82 = vector.broadcast %cst_44 : f32 to vector<8x128xf32>
    %83 = arith.maximumf %81, %82 : vector<8x128xf32>
    %cst_45 = arith.constant dense<0.000000e+00> : vector<8x128xf32>
    %84 = tpu.matmul %83, %2, %cst_45 {dimension_numbers = #tpu.dot_dimension_numbers<[1], [0], [0], [1], [0, 0, 1, 1], [], []>} : vector<8x128xf32>, vector<128x128xf32>, vector<8x128xf32> -> vector<8x128xf32>
    %85 = arith.addf %84, %19 : vector<8x128xf32>
    %cst_46 = arith.constant dense<0.000000e+00> : vector<8x128xf32>
    %86 = tpu.matmul %79, %3, %cst_46 {dimension_numbers = #tpu.dot_dimension_numbers<[1], [0], [0], [1], [0, 0, 1, 1], [], []>} : vector<8x128xf32>, vector<128x128xf32>, vector<8x128xf32> -> vector<8x128xf32>
    %87 = arith.addf %86, %22 : vector<8x128xf32>
    %cst_47 = arith.constant 0.000000e+00 : f32
    %88 = vector.broadcast %cst_47 : f32 to vector<8x128xf32>
    %89 = arith.maximumf %87, %88 : vector<8x128xf32>
    %cst_48 = arith.constant dense<0.000000e+00> : vector<8x128xf32>
    %90 = tpu.matmul %89, %4, %cst_48 {dimension_numbers = #tpu.dot_dimension_numbers<[1], [0], [0], [1], [0, 0, 1, 1], [], []>} : vector<8x128xf32>, vector<128x128xf32>, vector<8x128xf32> -> vector<8x128xf32>
    %91 = arith.addf %90, %25 : vector<8x128xf32>
    %cst_49 = arith.constant dense<0.000000e+00> : vector<128xf32>
    %92 = vector.multi_reduction <add>, %91, %cst_49 [0] : vector<8x128xf32> to vector<128xf32>
    %93 = vector.shape_cast %92 : vector<128xf32> to vector<1x128xf32>
    %94 = vector.broadcast %93 : vector<1x128xf32> to vector<8x128xf32>
    %95 = arith.subf %94, %91 : vector<8x128xf32>
    %96 = arith.addf %85, %95 : vector<8x128xf32>
    %cst_50 = arith.constant 1.250000e-01 : f32
    %97 = vector.broadcast %cst_50 : f32 to vector<8x128xf32>
    %98 = arith.mulf %96, %97 : vector<8x128xf32>
    %cst_51 = arith.constant dense<0.000000e+00> : vector<8x128xf32>
    %99 = tpu.matmul %98, %5, %cst_51 {dimension_numbers = #tpu.dot_dimension_numbers<[1], [0], [0], [1], [0, 0, 1, 1], [], []>} : vector<8x128xf32>, vector<128x128xf32>, vector<8x128xf32> -> vector<8x128xf32>
    %100 = arith.addf %99, %28 : vector<8x128xf32>
    %cst_52 = arith.constant 0.000000e+00 : f32
    %101 = vector.broadcast %cst_52 : f32 to vector<8x128xf32>
    %102 = arith.maximumf %100, %101 : vector<8x128xf32>
    %cst_53 = arith.constant dense<0.000000e+00> : vector<8x128xf32>
    %103 = tpu.matmul %102, %6, %cst_53 {dimension_numbers = #tpu.dot_dimension_numbers<[1], [0], [0], [1], [0, 0, 1, 1], [], []>} : vector<8x128xf32>, vector<128x128xf32>, vector<8x128xf32> -> vector<8x128xf32>
    %104 = arith.addf %103, %31 : vector<8x128xf32>
    %cst_54 = arith.constant 0.000000e+00 : f32
    %105 = vector.broadcast %cst_54 : f32 to vector<8x128xf32>
    %106 = arith.maximumf %104, %105 : vector<8x128xf32>
    %cst_55 = arith.constant dense<0.000000e+00> : vector<8x128xf32>
    %107 = tpu.matmul %106, %7, %cst_55 {dimension_numbers = #tpu.dot_dimension_numbers<[1], [0], [0], [1], [0, 0, 1, 1], [], []>} : vector<8x128xf32>, vector<128x128xf32>, vector<8x128xf32> -> vector<8x128xf32>
    %108 = arith.addf %107, %34 : vector<8x128xf32>
    %cst_56 = arith.constant dense<0.000000e+00> : vector<8x256xf32>
    %109 = tpu.matmul %108, %0, %cst_56 {dimension_numbers = #tpu.dot_dimension_numbers<[1], [0], [0], [1], [0, 0, 1, 1], [], []>} : vector<8x128xf32>, vector<128x256xf32>, vector<8x256xf32> -> vector<8x256xf32>
    %110 = arith.addf %109, %13 : vector<8x256xf32>
    %cst_57 = arith.constant 0.000000e+00 : f32
    %111 = vector.broadcast %cst_57 : f32 to vector<8x256xf32>
    %112 = arith.maximumf %110, %111 : vector<8x256xf32>
    %113 = vector.extract_strided_slice %112 {offsets = [0, 0], sizes = [8, 128], strides = [1, 1]} : vector<8x256xf32> to vector<8x128xf32>
    %114 = vector.extract_strided_slice %112 {offsets = [0, 128], sizes = [8, 128], strides = [1, 1]} : vector<8x256xf32> to vector<8x128xf32>
    %cst_58 = arith.constant dense<0.000000e+00> : vector<8x128xf32>
    %115 = tpu.matmul %113, %1, %cst_58 {dimension_numbers = #tpu.dot_dimension_numbers<[1], [0], [0], [1], [0, 0, 1, 1], [], []>} : vector<8x128xf32>, vector<128x128xf32>, vector<8x128xf32> -> vector<8x128xf32>
    %116 = arith.addf %115, %16 : vector<8x128xf32>
    %cst_59 = arith.constant 0.000000e+00 : f32
    %117 = vector.broadcast %cst_59 : f32 to vector<8x128xf32>
    %118 = arith.maximumf %116, %117 : vector<8x128xf32>
    %cst_60 = arith.constant dense<0.000000e+00> : vector<8x128xf32>
    %119 = tpu.matmul %118, %2, %cst_60 {dimension_numbers = #tpu.dot_dimension_numbers<[1], [0], [0], [1], [0, 0, 1, 1], [], []>} : vector<8x128xf32>, vector<128x128xf32>, vector<8x128xf32> -> vector<8x128xf32>
    %120 = arith.addf %119, %19 : vector<8x128xf32>
    %cst_61 = arith.constant dense<0.000000e+00> : vector<8x128xf32>
    %121 = tpu.matmul %114, %3, %cst_61 {dimension_numbers = #tpu.dot_dimension_numbers<[1], [0], [0], [1], [0, 0, 1, 1], [], []>} : vector<8x128xf32>, vector<128x128xf32>, vector<8x128xf32> -> vector<8x128xf32>
    %122 = arith.addf %121, %22 : vector<8x128xf32>
    %cst_62 = arith.constant 0.000000e+00 : f32
    %123 = vector.broadcast %cst_62 : f32 to vector<8x128xf32>
    %124 = arith.maximumf %122, %123 : vector<8x128xf32>
    %cst_63 = arith.constant dense<0.000000e+00> : vector<8x128xf32>
    %125 = tpu.matmul %124, %4, %cst_63 {dimension_numbers = #tpu.dot_dimension_numbers<[1], [0], [0], [1], [0, 0, 1, 1], [], []>} : vector<8x128xf32>, vector<128x128xf32>, vector<8x128xf32> -> vector<8x128xf32>
    %126 = arith.addf %125, %25 : vector<8x128xf32>
    %cst_64 = arith.constant dense<0.000000e+00> : vector<128xf32>
    %127 = vector.multi_reduction <add>, %126, %cst_64 [0] : vector<8x128xf32> to vector<128xf32>
    %128 = vector.shape_cast %127 : vector<128xf32> to vector<1x128xf32>
    %129 = vector.broadcast %128 : vector<1x128xf32> to vector<8x128xf32>
    %130 = arith.subf %129, %126 : vector<8x128xf32>
    %131 = arith.addf %120, %130 : vector<8x128xf32>
    %cst_65 = arith.constant 1.250000e-01 : f32
    %132 = vector.broadcast %cst_65 : f32 to vector<8x128xf32>
    %133 = arith.mulf %131, %132 : vector<8x128xf32>
    %cst_66 = arith.constant dense<0.000000e+00> : vector<8x128xf32>
    %134 = tpu.matmul %133, %5, %cst_66 {dimension_numbers = #tpu.dot_dimension_numbers<[1], [0], [0], [1], [0, 0, 1, 1], [], []>} : vector<8x128xf32>, vector<128x128xf32>, vector<8x128xf32> -> vector<8x128xf32>
    %135 = arith.addf %134, %28 : vector<8x128xf32>
    %cst_67 = arith.constant 0.000000e+00 : f32
    %136 = vector.broadcast %cst_67 : f32 to vector<8x128xf32>
    %137 = arith.maximumf %135, %136 : vector<8x128xf32>
    %cst_68 = arith.constant dense<0.000000e+00> : vector<8x128xf32>
    %138 = tpu.matmul %137, %6, %cst_68 {dimension_numbers = #tpu.dot_dimension_numbers<[1], [0], [0], [1], [0, 0, 1, 1], [], []>} : vector<8x128xf32>, vector<128x128xf32>, vector<8x128xf32> -> vector<8x128xf32>
    %139 = arith.addf %138, %31 : vector<8x128xf32>
    %cst_69 = arith.constant 0.000000e+00 : f32
    %140 = vector.broadcast %cst_69 : f32 to vector<8x128xf32>
    %141 = arith.maximumf %139, %140 : vector<8x128xf32>
    %cst_70 = arith.constant dense<0.000000e+00> : vector<8x128xf32>
    %142 = tpu.matmul %141, %7, %cst_70 {dimension_numbers = #tpu.dot_dimension_numbers<[1], [0], [0], [1], [0, 0, 1, 1], [], []>} : vector<8x128xf32>, vector<128x128xf32>, vector<8x128xf32> -> vector<8x128xf32>
    %143 = arith.addf %142, %34 : vector<8x128xf32>
    %cst_71 = arith.constant dense<0.000000e+00> : vector<8x128xf32>
    %144 = tpu.matmul %143, %8, %cst_71 {dimension_numbers = #tpu.dot_dimension_numbers<[1], [0], [0], [1], [0, 0, 1, 1], [], []>} : vector<8x128xf32>, vector<128x128xf32>, vector<8x128xf32> -> vector<8x128xf32>
    %145 = vector.broadcast %37 : vector<1x128xf32> to vector<8x128xf32>
    %146 = arith.addf %144, %145 : vector<8x128xf32>
    %cst_72 = arith.constant 0.000000e+00 : f32
    %147 = vector.broadcast %cst_72 : f32 to vector<8x128xf32>
    %148 = arith.maximumf %146, %147 : vector<8x128xf32>
    %cst_73 = arith.constant dense<0.000000e+00> : vector<8x128xf32>
    %149 = tpu.matmul %148, %9, %cst_73 {dimension_numbers = #tpu.dot_dimension_numbers<[1], [0], [0], [1], [0, 0, 1, 1], [], []>} : vector<8x128xf32>, vector<128x128xf32>, vector<8x128xf32> -> vector<8x128xf32>
    %150 = vector.broadcast %35 : vector<1x128xf32> to vector<8x128xf32>
    %151 = arith.addf %149, %150 : vector<8x128xf32>
    %cst_74 = arith.constant 0.000000e+00 : f32
    %152 = vector.broadcast %cst_74 : f32 to vector<8x128xf32>
    %153 = arith.maximumf %151, %152 : vector<8x128xf32>
    %cst_75 = arith.constant dense<0.000000e+00> : vector<8x128xf32>
    %154 = tpu.matmul %153, %10, %cst_75 {dimension_numbers = #tpu.dot_dimension_numbers<[1], [0], [0], [1], [0, 0, 1, 1], [], []>} : vector<8x128xf32>, vector<128x128xf32>, vector<8x128xf32> -> vector<8x128xf32>
    %155 = vector.broadcast %36 : vector<1x128xf32> to vector<8x128xf32>
    %156 = arith.addf %154, %155 : vector<8x128xf32>
    %157 = arith.negf %156 : vector<8x128xf32>
    %158 = math.exp %157 : vector<8x128xf32>
    %cst_76 = arith.constant 1.000000e+00 : f32
    %159 = vector.broadcast %cst_76 : f32 to vector<8x128xf32>
    %160 = arith.addf %159, %158 : vector<8x128xf32>
    %161 = arith.divf %159, %160 : vector<8x128xf32>
    %c0_77 = arith.constant 0 : index
    %c0_78 = arith.constant 0 : index
    %162 = vector.load %arg5[%c0_77, %c0_78] : memref<8x128xf32, #tpu.memory_space<vmem>>, vector<8x128xf32>
    tpu.vector_store %arg5[%c0_77, %c0_78], %161 {strides = array<i32>} : memref<8x128xf32, #tpu.memory_space<vmem>>, vector<8x128xf32>,
    return
  }
}

</mosaic_0001>

<bundles_post_ra>
// kernel: vae_decoder_pallas.1
= control target key start
LH: loop header
LB: loop body
LE: loop exit
PB: predicated region body
PF: predicated region fallthrough
CT: control target
= control target key end

     0   :  { %10 = vsyncpa [#allocation3], 0  ;;  %s4832_s0 = inlined_call_operand.vmem [shape: f32[8,128], index: 0, kind: input, shape index: {}]   ;;  %s4833_s1 = inlined_call_operand.vmem [shape: f32[1,128], index: 1, kind: input, shape index: {}]   ;;  %s4834_s2 = inlined_call_operand.hbm [shape: f32[128,256], index: 2, kind: input, shape index: {}]   ;;  %s4835_s3 = inlined_call_operand.hbm [shape: f32[1280,128], index: 3, kind: input, shape index: {}]   ;;  %s4836_s4 = inlined_call_operand.vmem [shape: f32[10,256], index: 4, kind: input, shape index: {}]   ;;  %s4837_s5 = inlined_call_operand.vmem [shape: f32[8,128], index: 5, kind: output, shape index: {}]  }
   0x1   :  { %11 = vsyncpa [#allocation5], 0  ;;  %s3679_s18 = smov [#allocation2]  }
   0x2   :  { %s21_s19 = sshll.u32 %s3679_s18, 4  ;;  %s22_s19 = int_to_ptr.vmem [resolvable:$true] %s21_s19 }
   0x3   :  { %s3643_s20 = scalar_lea.vmem %s22_s19, 4096  ;;  %p3648_p1 = scmp.lt.s32.totalorder %s22_s19, %s22_s19 }
   0x4   :  { %p3644_p0 = scmp.ne.s32.totalorder %s22_s19, %s3643_s20  ;;  %p3649_p2 = scmp.lt.s32.totalorder %s3643_s20, %s3643_s20 }
   0x6   :  { %p3650_p3 = por %p3649_p2, %p3648_p1 }
   0x8   :  { %p3651_p4 = pnand %p3650_p3, %p3644_p0 }
   0xa   :  { %3654 = shalt.err (!%p3651_p4)
}
   0xb   :  { %s3680_s21 = smov 256   ;;  %s3681_s22 = smov 16  }
   0xc   :  { %27 = dma.hbm_to_vmem [thread:$0]  %s4834_s2, 4096, %s22_s19, [#allocation3], %s3680_s21, %s3680_s21, %s3681_s22  }
   0xd   :  { %s3682_s25 = smov [#allocation4]  }
   0xe   :  { %s33_s26 = sshll.u32 %s3682_s25, 4  ;;  %s34_s26 = int_to_ptr.vmem [resolvable:$true] %s33_s26 }
   0xf   :  { %s3663_s27 = scalar_lea.vmem %s34_s26, 20480  ;;  %p3668_p6 = scmp.lt.s32.totalorder %s34_s26, %s34_s26 }
  0x10   :  { %p3664_p5 = scmp.ne.s32.totalorder %s34_s26, %s3663_s27  ;;  %p3669_p7 = scmp.lt.s32.totalorder %s3663_s27, %s3663_s27 }
  0x12   :  { %p3670_p8 = por %p3669_p7, %p3668_p6 }
  0x14   :  { %p3671_p9 = pnand %p3670_p8, %p3664_p5 }
  0x16   :  { %3674 = shalt.err (!%p3671_p9)
}
  0x17   :  { %s3683_s28 = smov 128   ;;  %s3684_s29 = smov 8  }
  0x18   :  { %39 = dma.hbm_to_vmem [thread:$0]  %s4835_s3, 20480, %s34_s26, [#allocation5], %s3683_s28, %s3683_s28, %s3684_s29  }
  0x19   :  { %3675 = dma.done.wait [#allocation3], 4096  }
  0x1a   :  { %3676 = vsyncadd [#allocation3], 4294963200 }
  0x1b   :  { %3677 = dma.done.wait [#allocation5], 20480  }
  0x1c   :  { %3678 = vsyncadd [#allocation5], 4294946816  ;;  %v4917_v0 = vmov 0.0   ;;  %v3725_v1 = vld [vmem:[#allocation2 + $0xf8] sm:$0xff]  ;;  %v3727_v2 = vld [vmem:[#allocation2 + $0xf0] sm:$0xff]  ;;  %vm3686_vm0 = vmmov 0  }
  0x1d   :  { %327 = vmatprep.mubr.f32.mxu0 %v4917_v0  ;;  %2632 = vmatprep.subr.mxu1 %v4917_v0  ;;  %v3729_v3 = vld [vmem:[#allocation2 + $0xe8] sm:$0xff]  ;;  %v3732_v4 = vld [vmem:[#allocation2 + $0xe0] sm:$0xff]  ;;  %v3735_v5 = vld [vmem:[#allocation2 + $0xd8] sm:$0xff] }
  0x1e   :  { %263 = vmatprep.subr.mxu0 %v3725_v1  ;;  %v3738_v6 = vld [vmem:[#allocation2 + $0xd0] sm:$0xff]  ;;  %v3741_v7 = vld [vmem:[#allocation2 + $0xc8] sm:$0xff]  ;;  %v3744_v8 = vld [vmem:[#allocation2 + $0xc0] sm:$0xff]  ;;  %2664 = vmatprep.mubr.msk.f32.mxu1 %vm3686_vm0, %v4917_v0 }
  0x1f   :  { %264 = vmatpush1.msra.mxu0 %v3727_v2  ;;  %v3747_v9 = vld [vmem:[#allocation2 + $0xb8] sm:$0xff]  ;;  %v3750_v10 = vld [vmem:[#allocation2 + $0xb0] sm:$0xff]  ;;  %v3753_v11 = vld [vmem:[#allocation2 + $0xa8] sm:$0xff] }
  0x20   :  { %265 = vmatprep.subr.mxu0 %v3729_v3  ;;  %v3756_v12 = vld [vmem:[#allocation2 + $0xa0] sm:$0xff]  ;;  %v3759_v13 = vld [vmem:[#allocation2 + $0x98] sm:$0xff]  ;;  %v3762_v14 = vld [vmem:[#allocation2 + $0x90] sm:$0xff] }
  0x21   :  { %266 = vmatpush1.msra.mxu0 %v3732_v4  ;;  %v3764_v15 = vld [vmem:[#allocation4 + $0x78] sm:$0xff]  ;;  %v3766_v16 = vld [vmem:[#allocation4 + $0x70] sm:$0xff]  ;;  %v3769_v17 = vld [vmem:[#allocation2 + $0x88] sm:$0xff] }
  0x22   :  { %267 = vmatprep.subr.mxu0 %v3735_v5  ;;  %2633 = vmatpush3.msra.mxu1 %v3764_v15  ;;  %v3773_v18 = vld [vmem:[#allocation2 + $0x80] sm:$0xff]  ;;  %v3776_v19 = vld [vmem:[#allocation4 + $0x68] sm:$0xff]  ;;  %v3779_v20 = vld [vmem:[#allocation2 + $0x78] sm:$0xff] }
  0x23   :  { %268 = vmatpush1.msra.mxu0 %v3738_v6  ;;  %2634 = vmatprep.subr.mxu1 %v4917_v0  ;;  %v3783_v21 = vld [vmem:[#allocation2 + $0x70] sm:$0xff]  ;;  %v3786_v22 = vld [vmem:[#allocation4 + $0x60] sm:$0xff]  ;;  %v3789_v23 = vld [vmem:[#allocation2 + $0x68] sm:$0xff] }
  0x24   :  { %269 = vmatprep.subr.mxu0 %v3741_v7  ;;  %2635 = vmatpush3.msra.mxu1 %v3766_v16  ;;  %v3793_v24 = vld [vmem:[#allocation2 + $0x60] sm:$0xff]  ;;  %v3796_v25 = vld [vmem:[#allocation4 + $0x58] sm:$0xff]  ;;  %v3803_v27 = vld [vmem:[#allocation2 + $0x50] sm:$0xff] }
  0x25   :  { %270 = vmatpush1.msra.mxu0 %v3744_v8  ;;  %2636 = vmatprep.subr.mxu1 %v4917_v0  ;;  %v3799_v26 = vld [vmem:[#allocation2 + $0x58] sm:$0xff]  ;;  %v3806_v28 = vld [vmem:[#allocation4 + $0x50] sm:$0xff]  ;;  %v3809_v29 = vld [vmem:[#allocation2 + $0x48] sm:$0xff] }
  0x26   :  { %271 = vmatprep.subr.mxu0 %v3747_v9  ;;  %2637 = vmatpush3.msra.mxu1 %v3776_v19  ;;  %v3813_v30 = vld [vmem:[#allocation2 + $0x40] sm:$0xff]  ;;  %v3816_v31 = vld [vmem:[#allocation4 + $0x48] sm:$0xff]  ;;  %v3819_v32 = vld [vmem:[#allocation2 + $0x38] sm:$0xff] }
  0x27   :  { %272 = vmatpush1.msra.mxu0 %v3750_v10  ;;  %2638 = vmatprep.subr.mxu1 %v4917_v0  ;;  %v3823_v33 = vld [vmem:[#allocation2 + $0x30] sm:$0xff]  ;;  %v3826_v34 = vld [vmem:[#allocation4 + $0x40] sm:$0xff]  ;;  %v3829_v35 = vld [vmem:[#allocation2 + $0x28] sm:$0xff] }
  0x28   :  { %273 = vmatprep.subr.mxu0 %v3753_v11  ;;  %2639 = vmatpush3.msra.mxu1 %v3786_v22  ;;  %v3833_v36 = vld [vmem:[#allocation2 + $0x20] sm:$0xff]  ;;  %v3836_v37 = vld [vmem:[#allocation4 + $0x38] sm:$0xff]  ;;  %v3843_v39 = vld [vmem:[#allocation2 + $0x10] sm:$0xff] }
  0x29   :  { %274 = vmatpush1.msra.mxu0 %v3756_v12  ;;  %2640 = vmatprep.subr.mxu1 %v4917_v0  ;;  %v3839_v38 = vld [vmem:[#allocation2 + $0x18] sm:$0xff]  ;;  %v3846_v40 = vld [vmem:[#allocation4 + $0x30] sm:$0xff]  ;;  %v3849_v41 = vld [vmem:[#allocation2 + $0x8] sm:$0xff] }
  0x2a   :  { %275 = vmatprep.subr.mxu0 %v3759_v13  ;;  %2641 = vmatpush3.msra.mxu1 %v3796_v25  ;;  %v3853_v42 = vld [vmem:[#allocation2] sm:$0xff]  ;;  %v3856_v43 = vld [vmem:[#allocation4 + $0x28] sm:$0xff]  ;;  %v3870_v46 = vld [vmem:[#allocation4 + $0x18] sm:$0xff] }
  0x2b   :  { %276 = vmatpush1.msra.mxu0 %v3762_v14  ;;  %2642 = vmatprep.subr.mxu1 %v4917_v0  ;;  %v262_v44 = vld [vmem:[%s4832_s0] sm:$0xff]  ;;  %v3875_v47 = vld [vmem:[#allocation4 + $0x10] sm:$0xff]  ;;  %v3881_v48 = vld [vmem:[#allocation4 + $0x8] sm:$0xff] }
  0x2c   :  { %277 = vmatprep.subr.mxu0 %v3769_v17  ;;  %2643 = vmatpush3.msra.mxu1 %v3806_v28  ;;  %v3865_v45 = vld [vmem:[#allocation4 + $0x20] sm:$0xff]  ;;  %v3893_v50 = vld [vmem:[#allocation4 + $0xf8] sm:$0xff]  ;;  %v3895_v51 = vld [vmem:[#allocation4 + $0xf0] sm:$0xff] }
  0x2d   :  { %278 = vmatpush1.msra.mxu0 %v3773_v18  ;;  %2644 = vmatprep.subr.mxu1 %v4917_v0  ;;  %v3885_v49 = vld [vmem:[#allocation4] sm:$0xff]  ;;  %4931 = vst [vmem:[#allocation9_spill] sm:$0xff] %v3893_v50  ;;  %4932 = vst [vmem:[#allocation10_spill] sm:$0xff] %v3895_v51  ;;  %v3899_v52 = vld [vmem:[#allocation4 + $0xe8] sm:$0xff] }
  0x2e   :  { %279 = vmatprep.subr.mxu0 %v3779_v20  ;;  %2645 = vmatpush3.msra.mxu1 %v3816_v31  ;;  %4930 = vst [vmem:[#allocation8_spill] sm:$0xff] %v3885_v49  ;;  %4933 = vst [vmem:[#allocation11_spill] sm:$0xff] %v3899_v52  ;;  %v3903_v53 = vld [vmem:[#allocation4 + $0xe0] sm:$0xff]  ;;  %v3907_v54 = vld [vmem:[#allocation4 + $0xd8] sm:$0xff] }
  0x2f   :  { %280 = vmatpush1.msra.mxu0 %v3783_v21  ;;  %2646 = vmatprep.subr.mxu1 %v4917_v0  ;;  %4934 = vst [vmem:[#allocation12_spill] sm:$0xff] %v3903_v53  ;;  %4935 = vst [vmem:[#allocation13_spill] sm:$0xff] %v3907_v54  ;;  %v3911_v55 = vld [vmem:[#allocation4 + $0xd0] sm:$0xff]  ;;  %v3915_v56 = vld [vmem:[#allocation4 + $0xc8] sm:$0xff] }
  0x30   :  { %281 = vmatprep.subr.mxu0 %v3789_v23  ;;  %2647 = vmatpush3.msra.mxu1 %v3826_v34  ;;  %4936 = vst [vmem:[#allocation14_spill] sm:$0xff] %v3911_v55  ;;  %4937 = vst [vmem:[#allocation15_spill] sm:$0xff] %v3915_v56  ;;  %v3919_v57 = vld [vmem:[#allocation4 + $0xc0] sm:$0xff]  ;;  %v3923_v58 = vld [vmem:[#allocation4 + $0xb8] sm:$0xff] }
  0x31   :  { %282 = vmatpush1.msra.mxu0 %v3793_v24  ;;  %2648 = vmatprep.subr.mxu1 %v4917_v0  ;;  %4938 = vst [vmem:[#allocation16_spill] sm:$0xff] %v3919_v57  ;;  %4939 = vst [vmem:[#allocation17_spill] sm:$0xff] %v3923_v58  ;;  %v3927_v59 = vld [vmem:[#allocation4 + $0xb0] sm:$0xff]  ;;  %v3931_v60 = vld [vmem:[#allocation4 + $0xa8] sm:$0xff] }
  0x32   :  { %283 = vmatprep.subr.mxu0 %v3799_v26  ;;  %2649 = vmatpush3.msra.mxu1 %v3836_v37  ;;  %4940 = vst [vmem:[#allocation18_spill] sm:$0xff] %v3927_v59  ;;  %4941 = vst [vmem:[#allocation19_spill] sm:$0xff] %v3931_v60  ;;  %v3935_v61 = vld [vmem:[#allocation4 + $0xa0] sm:$0xff]  ;;  %v3939_v62 = vld [vmem:[#allocation4 + $0x98] sm:$0xff] }
  0x33   :  { %284 = vmatpush1.msra.mxu0 %v3803_v27  ;;  %2650 = vmatprep.subr.mxu1 %v4917_v0  ;;  %4942 = vst [vmem:[#allocation20_spill] sm:$0xff] %v3935_v61  ;;  %4943 = vst [vmem:[#allocation21_spill] sm:$0xff] %v3939_v62  ;;  %v3943_v63 = vld [vmem:[#allocation4 + $0x90] sm:$0xff] }
  0x34   :  { %285 = vmatprep.subr.mxu0 %v3809_v29  ;;  %2651 = vmatpush3.msra.mxu1 %v3846_v40  ;;  %4944 = vst [vmem:[#allocation22_spill] sm:$0xff] %v3943_v63 }
  0x35   :  { %286 = vmatpush1.msra.mxu0 %v3813_v30  ;;  %2652 = vmatprep.subr.mxu1 %v4917_v0 }
  0x36   :  { %287 = vmatprep.subr.mxu0 %v3819_v32  ;;  %2653 = vmatpush3.msra.mxu1 %v3856_v43 }
  0x37   :  { %288 = vmatpush1.msra.mxu0 %v3823_v33  ;;  %2654 = vmatprep.subr.mxu1 %v4917_v0 }
  0x38   :  { %289 = vmatprep.subr.mxu0 %v3829_v35  ;;  %2655 = vmatpush3.msra.mxu1 %v3865_v45 }
  0x39   :  { %290 = vmatpush1.msra.mxu0 %v3833_v36  ;;  %2656 = vmatprep.subr.mxu1 %v4917_v0 }
  0x3a   :  { %291 = vmatprep.subr.mxu0 %v3839_v38  ;;  %2657 = vmatpush3.msra.mxu1 %v3870_v46 }
  0x3b   :  { %292 = vmatpush1.msra.mxu0 %v3843_v39  ;;  %2658 = vmatprep.subr.mxu1 %v4917_v0 }
  0x3c   :  { %293 = vmatprep.subr.mxu0 %v3849_v41  ;;  %2659 = vmatpush3.msra.mxu1 %v3875_v47 }
  0x3d   :  { %294 = vmatpush1.msra.mxu0 %v3853_v42  ;;  %2660 = vmatprep.subr.mxu1 %v4917_v0 }
  0x3e   :  { %328 = vmatmul.mubr.f32.vlgmr.msra.gmra.mxu0 %v262_v44  ;;  %2667 = vmatprep.subr.mxu0 %v4917_v0  ;;  %v242_v44 = vlaneseq }
  0x3f   :  { %2661 = vmatpush3.msra.mxu1 %v3881_v48  ;;  %2699 = vmatprep.mubr.msk.f32.mxu0 %vm3686_vm0, %v4917_v0 }
  0x40   :  { %2662 = vmatprep.subr.mxu1 %v4917_v0  ;;  %2668 = vmatpush3.msra.mxu0 %v3893_v50 }
  0x41   :  { %2663 = vmatpush3.msra.mxu1 %v3885_v49  ;;  %2669 = vmatprep.subr.mxu0 %v4917_v0  ;;  %v5012_v49 = vmov 0.0  }
  0x42   :  { %2702 = vmatprep.subr.mxu1 %v4917_v0  ;;  %2670 = vmatpush3.msra.mxu0 %v3895_v51 }
  0x43   :  { %2671 = vmatprep.subr.mxu0 %v4917_v0 }
  0x44   :  { %2672 = vmatpush3.msra.mxu0 %v3899_v52 }
  0x45   :  { %2673 = vmatprep.subr.mxu0 %v4917_v0 }
  0x46   :  { %2674 = vmatpush3.msra.mxu0 %v3903_v53 }
  0x47   :  { %2675 = vmatprep.subr.mxu0 %v4917_v0 }
  0x48   :  { %2676 = vmatpush3.msra.mxu0 %v3907_v54  ;;  %v3957_v54 = vld [vmem:[#allocation4 + $0x170] sm:$0xff] }
  0x49   :  { %2677 = vmatprep.subr.mxu0 %v4917_v0  ;;  %4947 = vst [vmem:[#allocation25_spill] sm:$0xff] %v3957_v54 }
  0x4a   :  { %2678 = vmatpush3.msra.mxu0 %v3911_v55 }
  0x4b   :  { %2679 = vmatprep.subr.mxu0 %v4917_v0 }
  0x4c   :  { %2680 = vmatpush3.msra.mxu0 %v3915_v56 }
  0x4d   :  { %2681 = vmatprep.subr.mxu0 %v4917_v0 }
  0x4e   :  { %2682 = vmatpush3.msra.mxu0 %v3919_v57 }
  0x4f   :  { %2683 = vmatprep.subr.mxu0 %v4917_v0 }
  0x50   :  { %2684 = vmatpush3.msra.mxu0 %v3923_v58  ;;  %v240_v58 = vld [vmem:[%s4836_s4] ss:$8 sm:$0x3] }
  0x51   :  { %2685 = vmatprep.subr.mxu0 %v4917_v0 }
  0x52   :  { %2686 = vmatpush3.msra.mxu0 %v3927_v59 }
  0x53   :  { %2687 = vmatprep.subr.mxu0 %v4917_v0 }
  0x54   :  { %2688 = vmatpush3.msra.mxu0 %v3931_v60  ;;  %v243_v60 = vshrl.u32 %v242_v44, 7  ;;  %v3963_v44 = vld [vmem:[#allocation4 + $0x168] sm:$0xff] }
  0x55   :  { %2689 = vmatprep.subr.mxu0 %v4917_v0  ;;  %4948 = vst [vmem:[#allocation26_spill] sm:$0xff] %v3963_v44 }
  0x56   :  { %2690 = vmatpush3.msra.mxu0 %v3935_v61  ;;  %v244_v59 = vsub.s32 0, %v243_v60 }
  0x57   :  { %2691 = vmatprep.subr.mxu0 %v4917_v0 }
  0x58   :  { %2692 = vmatpush3.msra.mxu0 %v3939_v62  ;;  %v3952_v61 = vrot.slane %v240_v58, %v244_v59  ;;  %v3955_v62 = vld [vmem:[#allocation4 + $0x178] sm:$0xff]  ;;  %v3979_v59 = vld [vmem:[#allocation4 + $0x148] sm:$0xff] }
  0x59   :  { %2693 = vmatprep.subr.mxu0 %v4917_v0  ;;  %4946 = vst [vmem:[#allocation24_spill] sm:$0xff] %v3955_v62  ;;  %4952 = vst [vmem:[#allocation30_spill] sm:$0xff] %v3979_v59 }
  0x5a   :  { %2694 = vmatpush3.msra.mxu0 %v3943_v63  ;;  %4945 = vst [vmem:[#allocation23_spill] sm:$0xff] %v3952_v61 }
  0x5b   :  { %2695 = vmatprep.subr.mxu0 %v4917_v0 }
  0xfe   :  { %v329_v57 = vpop.f32.mrf.mxu0 }
  0xff   :  { %v330_v56 = vadd.f32 %v329_v57, %v3952_v61  ;;  %v3967_v57 = vld [vmem:[#allocation4 + $0x160] sm:$0xff]  ;;  %v4048_v61 = vld [vmem:[#allocation4 + $0x1e8] sm:$0xff] }
 0x100   :  { %4949 = vst [vmem:[#allocation27_spill] sm:$0xff] %v3967_v57  ;;  %4968 = vst [vmem:[#allocation46_spill] sm:$0xff] %v4048_v61 }
 0x101   :  { %v334_v55 = vmax.f32 %v330_v56, 0.0  ;;  %v3975_v56 = vld [vmem:[#allocation4 + $0x150] sm:$0xff] }
 0x102   :  { %4951 = vst [vmem:[#allocation29_spill] sm:$0xff] %v3975_v56 }
 0x103   :  { %2665 = vmatmul.mubr.f32.vlgmr.msra.gmra.mxu1 %v334_v55  ;;  %v3971_v55 = vld [vmem:[#allocation4 + $0x158] sm:$0xff] }
 0x104   :  { %2703 = vmatpush3.msra.mxu1 %v3955_v62  ;;  %2734 = vmatprep.mubr.msk.f32.mxu1 %vm3686_vm0, %v4917_v0  ;;  %4950 = vst [vmem:[#allocation28_spill] sm:$0xff] %v3971_v55  ;;  %v4005_v62 = vld [vmem:[#allocation4 + $0x118] sm:$0xff] }
 0x105   :  { %2704 = vmatprep.subr.mxu1 %v4917_v0  ;;  %4959 = vst [vmem:[#allocation37_spill] sm:$0xff] %v4005_v62 }
 0x106   :  { %2705 = vmatpush3.msra.mxu1 %v3957_v54  ;;  %v248_v54 = vsub.s32 1, %v243_v60  ;;  %v4009_v60 = vld [vmem:[#allocation4 + $0x110] sm:$0xff] }
 0x107   :  { %2706 = vmatprep.subr.mxu1 %v4917_v0  ;;  %4960 = vst [vmem:[#allocation38_spill] sm:$0xff] %v4009_v60 }
 0x108   :  { %2707 = vmatpush3.msra.mxu1 %v3963_v44  ;;  %v3983_v44 = vld [vmem:[#allocation4 + $0x140] sm:$0xff] }
 0x109   :  { %2708 = vmatprep.subr.mxu1 %v4917_v0  ;;  %4953 = vst [vmem:[#allocation31_spill] sm:$0xff] %v3983_v44 }
 0x10a   :  { %2709 = vmatpush3.msra.mxu1 %v3967_v57  ;;  %v3987_v57 = vld [vmem:[#allocation4 + $0x138] sm:$0xff] }
 0x10b   :  { %2710 = vmatprep.subr.mxu1 %v4917_v0  ;;  %4954 = vst [vmem:[#allocation32_spill] sm:$0xff] %v3987_v57 }
 0x10c   :  { %2711 = vmatpush3.msra.mxu1 %v3971_v55  ;;  %v3991_v55 = vld [vmem:[#allocation4 + $0x130] sm:$0xff] }
 0x10d   :  { %2712 = vmatprep.subr.mxu1 %v4917_v0  ;;  %4955 = vst [vmem:[#allocation33_spill] sm:$0xff] %v3991_v55 }
 0x10e   :  { %2713 = vmatpush3.msra.mxu1 %v3975_v56  ;;  %v3995_v56 = vld [vmem:[#allocation4 + $0x128] sm:$0xff] }
 0x10f   :  { %2714 = vmatprep.subr.mxu1 %v4917_v0  ;;  %4956 = vst [vmem:[#allocation34_spill] sm:$0xff] %v3995_v56 }
 0x110   :  { %2715 = vmatpush3.msra.mxu1 %v3979_v59  ;;  %v3999_v59 = vld [vmem:[#allocation4 + $0x120] sm:$0xff] }
 0x111   :  { %2716 = vmatprep.subr.mxu1 %v4917_v0  ;;  %4957 = vst [vmem:[#allocation35_spill] sm:$0xff] %v3999_v59 }
 0x112   :  { %2717 = vmatpush3.msra.mxu1 %v3983_v44  ;;  %v4002_v44 = vrot.slane %v240_v58, %v248_v54  ;;  %v4018_v54 = vld [vmem:[#allocation4 + $0x100] sm:$0xff] }
 0x113   :  { %2718 = vmatprep.subr.mxu1 %v4917_v0  ;;  %4962 = vst [vmem:[#allocation40_spill] sm:$0xff] %v4018_v54 }
 0x114   :  { %2719 = vmatpush3.msra.mxu1 %v3987_v57  ;;  %4958 = vst [vmem:[#allocation36_spill] sm:$0xff] %v4002_v44  ;;  %v331_v57 = vpop.f32.mrf.mxu0 }
 0x115   :  { %2720 = vmatprep.subr.mxu1 %v4917_v0 }
 0x116   :  { %2721 = vmatpush3.msra.mxu1 %v3991_v55  ;;  %v332_v55 = vadd.f32 %v331_v57, %v4002_v44  ;;  %v4026_v57 = vld [vmem:[#allocation4 + $0x88] sm:$0xff] }
 0x117   :  { %2722 = vmatprep.subr.mxu1 %v4917_v0  ;;  %4963 = vst [vmem:[#allocation41_spill] sm:$0xff] %v4026_v57  ;;  %2696 = vmatpush3.msra.mxu0 %v4026_v57 }
 0x118   :  { %2723 = vmatpush3.msra.mxu1 %v3995_v56  ;;  %v4014_v56 = vld [vmem:[#allocation4 + $0x108] sm:$0xff]  ;;  %v335_v58 = vmax.f32 %v332_v55, 0.0  ;;  %2697 = vmatprep.subr.mxu0 %v4917_v0  ;;  %v4037_v55 = vld [vmem:[%s4836_s4 + $0x1] ss:$0 sm:$0xff] }
 0x119   :  { %2724 = vmatprep.subr.mxu1 %v4917_v0  ;;  %4961 = vst [vmem:[#allocation39_spill] sm:$0xff] %v4014_v56  ;;  %4965 = vst [vmem:[#allocation43_spill] sm:$0xff] %v4037_v55 }
 0x11a   :  { %2725 = vmatpush3.msra.mxu1 %v3999_v59  ;;  %v4042_v59 = vld [vmem:[#allocation4 + $0x1f0] sm:$0xff] }
 0x11b   :  { %2726 = vmatprep.subr.mxu1 %v4917_v0  ;;  %4967 = vst [vmem:[#allocation45_spill] sm:$0xff] %v4042_v59 }
 0x11c   :  { %2727 = vmatpush3.msra.mxu1 %v4005_v62  ;;  %v4040_v62 = vld [vmem:[#allocation4 + $0x1f8] sm:$0xff] }
 0x11d   :  { %2728 = vmatprep.subr.mxu1 %v4917_v0  ;;  %4966 = vst [vmem:[#allocation44_spill] sm:$0xff] %v4040_v62 }
 0x11e   :  { %2729 = vmatpush3.msra.mxu1 %v4009_v60  ;;  %v4030_v60 = vld [vmem:[#allocation4 + $0x80] sm:$0xff] }
 0x11f   :  { %2730 = vmatprep.subr.mxu1 %v4917_v0  ;;  %4964 = vst [vmem:[#allocation42_spill] sm:$0xff] %v4030_v60  ;;  %2698 = vmatpush3.msra.mxu0 %v4030_v60 }
 0x120   :  { %2731 = vmatpush3.msra.mxu1 %v4014_v56  ;;  %2737 = vmatprep.subr.mxu0 %v4917_v0 }
 0x121   :  { %2732 = vmatprep.subr.mxu1 %v4917_v0 }
 0x122   :  { %2733 = vmatpush3.msra.mxu1 %v4018_v54 }
 0x123   :  { %2735 = vmatmul.mubr.f32.vlgmr.msra.gmra.mxu1 %v335_v58  ;;  %2772 = vmatprep.subr.mxu1 %v4917_v0 }
 0x124   :  { %2804 = vmatprep.mubr.msk.f32.mxu1 %vm3686_vm0, %v4917_v0 }
 0x1c3   :  { %v402_v58 = vpop.f32.mrf.mxu1 }
 0x1c4   :  { %v403_v54 = vadd.f32 %v402_v58, %v4037_v55  ;;  %v4064_v58 = vld [vmem:[#allocation4 + $0x1c8] sm:$0xff] }
 0x1c5   :  { %v2666_v56 = vpop.f32.mrf.mxu1  ;;  %4972 = vst [vmem:[#allocation50_spill] sm:$0xff] %v4064_v58 }
 0x1c6   :  { %v406_v44 = vmax.f32 %v403_v54, 0.0  ;;  %v4052_v56 = vld [vmem:[#allocation4 + $0x1e0] sm:$0xff]  ;;  %v4060_v54 = vld [vmem:[#allocation4 + $0x1d0] sm:$0xff] }
 0x1c7   :  { %4969 = vst [vmem:[#allocation47_spill] sm:$0xff] %v4052_v56  ;;  %4971 = vst [vmem:[#allocation49_spill] sm:$0xff] %v4060_v54 }
 0x1c8   :  { %2700 = vmatmul.mubr.f32.vlgmr.msra.gmra.mxu0 %v406_v44  ;;  %v4056_v44 = vld [vmem:[#allocation4 + $0x1d8] sm:$0xff] }
 0x1c9   :  { %2738 = vmatpush3.msra.mxu0 %v4040_v62  ;;  %2769 = vmatprep.mubr.msk.f32.mxu0 %vm3686_vm0, %v4917_v0  ;;  %4970 = vst [vmem:[#allocation48_spill] sm:$0xff] %v4056_v44  ;;  %v4106_v62 = vld [vmem:[#allocation4 + $0x180] sm:$0xff] }
 0x1ca   :  { %2739 = vmatprep.subr.mxu0 %v4917_v0  ;;  %4982 = vst [vmem:[#allocation60_spill] sm:$0xff] %v4106_v62 }
 0x1cb   :  { %2740 = vmatpush3.msra.mxu0 %v4042_v59 }
 0x1cc   :  { %2741 = vmatprep.subr.mxu0 %v4917_v0 }
 0x1cd   :  { %2742 = vmatpush3.msra.mxu0 %v4048_v61  ;;  %v4068_v61 = vld [vmem:[#allocation4 + $0x1c0] sm:$0xff] }
 0x1ce   :  { %2743 = vmatprep.subr.mxu0 %v4917_v0  ;;  %4973 = vst [vmem:[#allocation51_spill] sm:$0xff] %v4068_v61 }
 0x1cf   :  { %2744 = vmatpush3.msra.mxu0 %v4052_v56  ;;  %v4072_v56 = vld [vmem:[#allocation4 + $0x1b8] sm:$0xff] }
 0x1d0   :  { %2745 = vmatprep.subr.mxu0 %v4917_v0  ;;  %4974 = vst [vmem:[#allocation52_spill] sm:$0xff] %v4072_v56 }
 0x1d1   :  { %2746 = vmatpush3.msra.mxu0 %v4056_v44  ;;  %v4076_v44 = vld [vmem:[#allocation4 + $0x1b0] sm:$0xff] }
 0x1d2   :  { %2747 = vmatprep.subr.mxu0 %v4917_v0  ;;  %4975 = vst [vmem:[#allocation53_spill] sm:$0xff] %v4076_v44 }
 0x1d3   :  { %2748 = vmatpush3.msra.mxu0 %v4060_v54  ;;  %v4080_v54 = vld [vmem:[#allocation4 + $0x1a8] sm:$0xff] }
 0x1d4   :  { %2749 = vmatprep.subr.mxu0 %v4917_v0  ;;  %4976 = vst [vmem:[#allocation54_spill] sm:$0xff] %v4080_v54 }
 0x1d5   :  { %2750 = vmatpush3.msra.mxu0 %v4064_v58  ;;  %v4084_v58 = vld [vmem:[#allocation4 + $0x1a0] sm:$0xff] }
 0x1d6   :  { %2751 = vmatprep.subr.mxu0 %v4917_v0  ;;  %4977 = vst [vmem:[#allocation55_spill] sm:$0xff] %v4084_v58 }
 0x1d7   :  { %2752 = vmatpush3.msra.mxu0 %v4068_v61  ;;  %v4088_v61 = vld [vmem:[#allocation4 + $0x198] sm:$0xff] }
 0x1d8   :  { %2753 = vmatprep.subr.mxu0 %v4917_v0  ;;  %4978 = vst [vmem:[#allocation56_spill] sm:$0xff] %v4088_v61 }
 0x1d9   :  { %2754 = vmatpush3.msra.mxu0 %v4072_v56  ;;  %v4092_v56 = vld [vmem:[#allocation4 + $0x190] sm:$0xff] }
 0x1da   :  { %2755 = vmatprep.subr.mxu0 %v4917_v0  ;;  %4979 = vst [vmem:[#allocation57_spill] sm:$0xff] %v4092_v56 }
 0x1db   :  { %2756 = vmatpush3.msra.mxu0 %v4076_v44  ;;  %v4098_v44 = vld [vmem:[%s4836_s4 + $0x3] ss:$0 sm:$0xff] }
 0x1dc   :  { %2757 = vmatprep.subr.mxu0 %v4917_v0  ;;  %4980 = vst [vmem:[#allocation58_spill] sm:$0xff] %v4098_v44 }
 0x1dd   :  { %2758 = vmatpush3.msra.mxu0 %v4080_v54  ;;  %v4101_v54 = vld [vmem:[#allocation4 + $0x188] sm:$0xff] }
 0x1de   :  { %2759 = vmatprep.subr.mxu0 %v4917_v0  ;;  %4981 = vst [vmem:[#allocation59_spill] sm:$0xff] %v4101_v54 }
 0x1df   :  { %2760 = vmatpush3.msra.mxu0 %v4084_v58 }
 0x1e0   :  { %2761 = vmatprep.subr.mxu0 %v4917_v0 }
 0x1e1   :  { %2762 = vmatpush3.msra.mxu0 %v4088_v61 }
 0x1e2   :  { %2763 = vmatprep.subr.mxu0 %v4917_v0 }
 0x1e3   :  { %v543_v59 = vpop.f32.mrf.mxu1  ;;  %2764 = vmatpush3.msra.mxu0 %v4092_v56  ;;  %v4114_v56 = vld [vmem:[#allocation4 + $0x278] sm:$0xff] }
 0x1e4   :  { %v544_v58 = vadd.f32 %v543_v59, %v4098_v44  ;;  %2765 = vmatprep.subr.mxu0 %v4917_v0  ;;  %4983 = vst [vmem:[#allocation61_spill] sm:$0xff] %v4114_v56  ;;  %v4116_v59 = vld [vmem:[#allocation4 + $0x270] sm:$0xff]  ;;  %2773 = vmatpush3.msra.mxu1 %v4114_v56  ;;  %v4142_v44 = vld [vmem:[#allocation4 + $0x240] sm:$0xff] }
 0x1e5   :  { %v2736_v55 = vpop.f32.mrf.mxu1  ;;  %2766 = vmatpush3.msra.mxu0 %v4101_v54  ;;  %4984 = vst [vmem:[#allocation62_spill] sm:$0xff] %v4116_v59  ;;  %2774 = vmatprep.subr.mxu1 %v4917_v0  ;;  %v4138_v54 = vld [vmem:[#allocation4 + $0x248] sm:$0xff]  ;;  %4990 = vst [vmem:[#allocation68_spill] sm:$0xff] %v4142_v44 }
 0x1e6   :  { %v547_v61 = vmax.f32 %v544_v58, 0.0  ;;  %2767 = vmatprep.subr.mxu0 %v4917_v0  ;;  %v4120_v55 = vld [vmem:[#allocation4 + $0x268] sm:$0xff]  ;;  %2775 = vmatpush3.msra.mxu1 %v4116_v59  ;;  %v4128_v58 = vld [vmem:[#allocation4 + $0x258] sm:$0xff]  ;;  %4989 = vst [vmem:[#allocation67_spill] sm:$0xff] %v4138_v54 }
 0x1e7   :  { %2768 = vmatpush3.msra.mxu0 %v4106_v62  ;;  %4985 = vst [vmem:[#allocation63_spill] sm:$0xff] %v4120_v55  ;;  %2776 = vmatprep.subr.mxu1 %v4917_v0  ;;  %4987 = vst [vmem:[#allocation65_spill] sm:$0xff] %v4128_v58  ;;  %v4134_v62 = vld [vmem:[#allocation4 + $0x250] sm:$0xff] }
 0x1e8   :  { %2770 = vmatmul.mubr.f32.vlgmr.msra.gmra.mxu0 %v547_v61  ;;  %2807 = vmatprep.subr.mxu0 %v4917_v0  ;;  %v4124_v61 = vld [vmem:[#allocation4 + $0x260] sm:$0xff]  ;;  %4988 = vst [vmem:[#allocation66_spill] sm:$0xff] %v4134_v62 }
 0x1e9   :  { %2839 = vmatprep.mubr.msk.f32.mxu0 %vm3686_vm0, %v4917_v0  ;;  %4986 = vst [vmem:[#allocation64_spill] sm:$0xff] %v4124_v61  ;;  %2777 = vmatpush3.msra.mxu1 %v4120_v55  ;;  %v4233_v55 = vld [vmem:[%s4836_s4 + $0x4] ss:$0 sm:$0xff] }
 0x1ea   :  { %2778 = vmatprep.subr.mxu1 %v4917_v0 }
 0x1eb   :  { %2779 = vmatpush3.msra.mxu1 %v4124_v61  ;;  %v4172_v61 = vld [vmem:[#allocation4 + $0x200] sm:$0xff] }
 0x1ec   :  { %2780 = vmatprep.subr.mxu1 %v4917_v0  ;;  %4998 = vst [vmem:[#allocation76_spill] sm:$0xff] %v4172_v61 }
 0x1ed   :  { %2781 = vmatpush3.msra.mxu1 %v4128_v58  ;;  %v4146_v58 = vld [vmem:[#allocation4 + $0x238] sm:$0xff] }
 0x1ee   :  { %2782 = vmatprep.subr.mxu1 %v4917_v0  ;;  %4991 = vst [vmem:[#allocation69_spill] sm:$0xff] %v4146_v58 }
 0x1ef   :  { %2783 = vmatpush3.msra.mxu1 %v4134_v62  ;;  %v4150_v62 = vld [vmem:[#allocation4 + $0x230] sm:$0xff] }
 0x1f0   :  { %2784 = vmatprep.subr.mxu1 %v4917_v0  ;;  %4992 = vst [vmem:[#allocation70_spill] sm:$0xff] %v4150_v62 }
 0x1f1   :  { %2785 = vmatpush3.msra.mxu1 %v4138_v54  ;;  %v4154_v54 = vld [vmem:[#allocation4 + $0x228] sm:$0xff] }
 0x1f2   :  { %2786 = vmatprep.subr.mxu1 %v4917_v0  ;;  %4993 = vst [vmem:[#allocation71_spill] sm:$0xff] %v4154_v54 }
 0x1f3   :  { %2787 = vmatpush3.msra.mxu1 %v4142_v44  ;;  %v4158_v44 = vld [vmem:[#allocation4 + $0x220] sm:$0xff] }
 0x1f4   :  { %2788 = vmatprep.subr.mxu1 %v4917_v0  ;;  %4994 = vst [vmem:[#allocation72_spill] sm:$0xff] %v4158_v44 }
 0x1f5   :  { %2789 = vmatpush3.msra.mxu1 %v4146_v58  ;;  %v4162_v58 = vld [vmem:[#allocation4 + $0x218] sm:$0xff] }
 0x1f6   :  { %2790 = vmatprep.subr.mxu1 %v4917_v0  ;;  %4995 = vst [vmem:[#allocation73_spill] sm:$0xff] %v4162_v58 }
 0x1f7   :  { %2791 = vmatpush3.msra.mxu1 %v4150_v62  ;;  %v4166_v62 = vld [vmem:[#allocation4 + $0x210] sm:$0xff] }
 0x1f8   :  { %2792 = vmatprep.subr.mxu1 %v4917_v0  ;;  %4996 = vst [vmem:[#allocation74_spill] sm:$0xff] %v4166_v62 }
 0x1f9   :  { %2793 = vmatpush3.msra.mxu1 %v4154_v54  ;;  %v4170_v54 = vld [vmem:[#allocation4 + $0x208] sm:$0xff] }
 0x1fa   :  { %2794 = vmatprep.subr.mxu1 %v4917_v0  ;;  %4997 = vst [vmem:[#allocation75_spill] sm:$0xff] %v4170_v54 }
 0x1fb   :  { %2795 = vmatpush3.msra.mxu1 %v4158_v44  ;;  %v4177_v44 = vld [vmem:[#allocation4 + $0x2f8] sm:$0xff] }
 0x1fc   :  { %2796 = vmatprep.subr.mxu1 %v4917_v0  ;;  %4999 = vst [vmem:[#allocation77_spill] sm:$0xff] %v4177_v44  ;;  %2808 = vmatpush3.msra.mxu0 %v4177_v44  ;;  %v4196_v44 = vld [vmem:[#allocation4 + $0x2d0] sm:$0xff] }
 0x1fd   :  { %2797 = vmatpush3.msra.mxu1 %v4162_v58  ;;  %v4179_v58 = vld [vmem:[#allocation4 + $0x2f0] sm:$0xff]  ;;  %2809 = vmatprep.subr.mxu0 %v4917_v0  ;;  %5004 = vst [vmem:[#allocation82_spill] sm:$0xff] %v4196_v44 }
 0x1fe   :  { %2798 = vmatprep.subr.mxu1 %v4917_v0  ;;  %5000 = vst [vmem:[#allocation78_spill] sm:$0xff] %v4179_v58  ;;  %2810 = vmatpush3.msra.mxu0 %v4179_v58  ;;  %v4200_v58 = vld [vmem:[#allocation4 + $0x2c8] sm:$0xff] }
 0x1ff   :  { %2799 = vmatpush3.msra.mxu1 %v4166_v62  ;;  %v4184_v62 = vld [vmem:[#allocation4 + $0x2e8] sm:$0xff]  ;;  %2811 = vmatprep.subr.mxu0 %v4917_v0  ;;  %5005 = vst [vmem:[#allocation83_spill] sm:$0xff] %v4200_v58 }
 0x200   :  { %2800 = vmatprep.subr.mxu1 %v4917_v0  ;;  %5001 = vst [vmem:[#allocation79_spill] sm:$0xff] %v4184_v62  ;;  %2812 = vmatpush3.msra.mxu0 %v4184_v62  ;;  %v4204_v62 = vld [vmem:[#allocation4 + $0x2c0] sm:$0xff] }
 0x201   :  { %2801 = vmatpush3.msra.mxu1 %v4170_v54  ;;  %v4188_v54 = vld [vmem:[#allocation4 + $0x2e0] sm:$0xff]  ;;  %2813 = vmatprep.subr.mxu0 %v4917_v0  ;;  %5006 = vst [vmem:[#allocation84_spill] sm:$0xff] %v4204_v62 }
 0x202   :  { %2802 = vmatprep.subr.mxu1 %v4917_v0  ;;  %5002 = vst [vmem:[#allocation80_spill] sm:$0xff] %v4188_v54  ;;  %2814 = vmatpush3.msra.mxu0 %v4188_v54  ;;  %v4208_v54 = vld [vmem:[#allocation4 + $0x2b8] sm:$0xff] }
 0x203   :  { %2803 = vmatpush3.msra.mxu1 %v4172_v61  ;;  %v4192_v61 = vld [vmem:[#allocation4 + $0x2d8] sm:$0xff]  ;;  %2815 = vmatprep.subr.mxu0 %v4917_v0  ;;  %5007 = vst [vmem:[#allocation85_spill] sm:$0xff] %v4208_v54 }
 0x204   :  { %2842 = vmatprep.subr.mxu1 %v4917_v0  ;;  %5003 = vst [vmem:[#allocation81_spill] sm:$0xff] %v4192_v61  ;;  %2816 = vmatpush3.msra.mxu0 %v4192_v61  ;;  %v4212_v61 = vld [vmem:[#allocation4 + $0x2b0] sm:$0xff] }
 0x205   :  { %2817 = vmatprep.subr.mxu0 %v4917_v0  ;;  %5008 = vst [vmem:[#allocation86_spill] sm:$0xff] %v4212_v61 }
 0x206   :  { %2818 = vmatpush3.msra.mxu0 %v4196_v44  ;;  %v4216_v44 = vld [vmem:[#allocation4 + $0x2a8] sm:$0xff] }
 0x207   :  { %2819 = vmatprep.subr.mxu0 %v4917_v0  ;;  %5009 = vst [vmem:[#allocation87_spill] sm:$0xff] %v4216_v44 }
 0x208   :  { %2820 = vmatpush3.msra.mxu0 %v4200_v58  ;;  %v4220_v58 = vld [vmem:[#allocation4 + $0x2a0] sm:$0xff] }
 0x209   :  { %2821 = vmatprep.subr.mxu0 %v4917_v0  ;;  %5010 = vst [vmem:[#allocation88_spill] sm:$0xff] %v4220_v58 }
 0x20a   :  { %2822 = vmatpush3.msra.mxu0 %v4204_v62  ;;  %v4224_v62 = vld [vmem:[#allocation4 + $0x298] sm:$0xff] }
 0x20b   :  { %2823 = vmatprep.subr.mxu0 %v4917_v0  ;;  %5011 = vst [vmem:[#allocation89_spill] sm:$0xff] %v4224_v62 }
 0x20c   :  { %2824 = vmatpush3.msra.mxu0 %v4208_v54 }
 0x20d   :  { %2825 = vmatprep.subr.mxu0 %v4917_v0 }
 0x20e   :  { %2826 = vmatpush3.msra.mxu0 %v4212_v61 }
 0x20f   :  { %2827 = vmatprep.subr.mxu0 %v4917_v0 }
 0x210   :  { %2828 = vmatpush3.msra.mxu0 %v4216_v44 }
 0x211   :  { %2829 = vmatprep.subr.mxu0 %v4917_v0 }
 0x212   :  { %2830 = vmatpush3.msra.mxu0 %v4220_v58 }
 0x213   :  { %2831 = vmatprep.subr.mxu0 %v4917_v0 }
 0x214   :  { %2832 = vmatpush3.msra.mxu0 %v4224_v62 }
 0x215   :  { %2833 = vmatprep.subr.mxu0 %v4917_v0  ;;  %v4239_v0 = vld [vmem:[%s4836_s4 + $0x2] ss:$0 sm:$0xff] }
 0x288   :  { %v473_v54 = vpop.f32.mrf.mxu0 }
 0x289   :  { %v474_v62 = vadd.f32 %v473_v54, %v4239_v0  ;;  %v4286_v54 = vld [vmem:[#allocation4 + $0x338] sm:$0xff] }
 0x28a   :  { %v2701_v61 = vpop.f32.mrf.mxu0  ;;  %5016 = vst [vmem:[#allocation93_spill] sm:$0xff] %v4286_v54 }
 0x2a8   :  { %v614_v44 = vpop.f32.mrf.mxu0 }
 0x2a9   :  { %v615_v59 = vadd.f32 %v614_v44, %v4233_v55  ;;  %v4282_v44 = vld [vmem:[#allocation4 + $0x340] sm:$0xff] }
 0x2aa   :  { %v2771_v56 = vpop.f32.mrf.mxu0  ;;  %5015 = vst [vmem:[#allocation92_spill] sm:$0xff] %v4282_v44 }
 0x2ab   :  { %v618_v60 = vrot.slane %v615_v59, 4  ;;  %v4244_v56 = vld [vmem:[#allocation4 + $0x290] sm:$0xff] }
 0x2ac   :  { %2834 = vmatpush3.msra.mxu0 %v4244_v56 }
 0x2ad   :  { %v619_v57 = vadd.f32 %v618_v60, %v615_v59  ;;  %2835 = vmatprep.subr.mxu0 %v5012_v49  ;;  %v4248_v60 = vld [vmem:[#allocation4 + $0x288] sm:$0xff] }
 0x2ae   :  { %2836 = vmatpush3.msra.mxu0 %v4248_v60 }
 0x2af   :  { %v620_v58 = vrot.slane %v619_v57, 2  ;;  %2837 = vmatprep.subr.mxu0 %v5012_v49 }
 0x2b1   :  { %v621_v63 = vadd.f32 %v620_v58, %v619_v57  ;;  %v4278_v57 = vld [vmem:[#allocation4 + $0x348] sm:$0xff] }
 0x2b2   :  { %5014 = vst [vmem:[#allocation91_spill] sm:$0xff] %v4278_v57  ;;  %v4294_v58 = vld [vmem:[#allocation4 + $0x328] sm:$0xff] }
 0x2b3   :  { %v622_v53 = vrot.slane %v621_v63, 1  ;;  %5018 = vst [vmem:[#allocation95_spill] sm:$0xff] %v4294_v58 }
 0x2b5   :  { %v623_v61 = vadd.f32 %v622_v53, %v621_v63  ;;  %v4252_v53 = vld [vmem:[#allocation4 + $0x280] sm:$0xff]  ;;  %v4270_v63 = vld [vmem:[#allocation4 + $0x358] sm:$0xff] }
 0x2b6   :  { %2838 = vmatpush3.msra.mxu0 %v4252_v53 }
 0x2b7   :  { %v624_v52 = vsub.f32 %v623_v61, %v615_v59  ;;  %839 = vmatprep.subr.mxu0 %v3725_v1  ;;  %v4274_v1 = vld [vmem:[#allocation4 + $0x350] sm:$0xff]  ;;  %v4298_v61 = vld [vmem:[#allocation4 + $0x320] sm:$0xff] }
 0x2b8   :  { %5013 = vst [vmem:[#allocation90_spill] sm:$0xff] %v4274_v1  ;;  %v4290_v59 = vld [vmem:[#allocation4 + $0x330] sm:$0xff] }
 0x2b9   :  { %v625_v51 = vadd.f32 %v624_v52, %v474_v62  ;;  %v4262_v52 = vld [vmem:[#allocation4 + $0x368] sm:$0xff]  ;;  %v4266_v62 = vld [vmem:[#allocation4 + $0x360] sm:$0xff]  ;;  %5017 = vst [vmem:[#allocation94_spill] sm:$0xff] %v4290_v59 }
 0x2bb   :  { %v626_v50 = vmul.f32 0.125, %v625_v51  ;;  %v4257_v51 = vld [vmem:[#allocation4 + $0x370] sm:$0xff] }
 0x2bd   :  { %2805 = vmatmul.mubr.f32.vlgmr.msra.gmra.mxu1 %v626_v50  ;;  %v4255_v50 = vld [vmem:[#allocation4 + $0x378] sm:$0xff] }
 0x2be   :  { %2874 = vmatprep.mubr.msk.f32.mxu1 %vm3686_vm0, %v5012_v49  ;;  %2843 = vmatpush3.msra.mxu1 %v4255_v50 }
 0x2bf   :  { %2844 = vmatprep.subr.mxu1 %v5012_v49 }
 0x2c0   :  { %2845 = vmatpush3.msra.mxu1 %v4257_v51 }
 0x2c1   :  { %2846 = vmatprep.subr.mxu1 %v5012_v49 }
 0x2c2   :  { %2847 = vmatpush3.msra.mxu1 %v4262_v52 }
 0x2c3   :  { %2848 = vmatprep.subr.mxu1 %v5012_v49 }
 0x2c4   :  { %2849 = vmatpush3.msra.mxu1 %v4266_v62 }
 0x2c5   :  { %2850 = vmatprep.subr.mxu1 %v5012_v49 }
 0x2c6   :  { %2851 = vmatpush3.msra.mxu1 %v4270_v63 }
 0x2c7   :  { %2852 = vmatprep.subr.mxu1 %v5012_v49 }
 0x2c8   :  { %2853 = vmatpush3.msra.mxu1 %v4274_v1 }
 0x2c9   :  { %2854 = vmatprep.subr.mxu1 %v5012_v49 }
 0x2ca   :  { %2855 = vmatpush3.msra.mxu1 %v4278_v57 }
 0x2cb   :  { %2856 = vmatprep.subr.mxu1 %v5012_v49 }
 0x2cc   :  { %2857 = vmatpush3.msra.mxu1 %v4282_v44  ;;  %v4302_v44 = vld [vmem:[#allocation4 + $0x318] sm:$0xff] }
 0x2cd   :  { %2858 = vmatprep.subr.mxu1 %v5012_v49 }
 0x2ce   :  { %2859 = vmatpush3.msra.mxu1 %v4286_v54 }
 0x2cf   :  { %2860 = vmatprep.subr.mxu1 %v5012_v49 }
 0x2d0   :  { %2861 = vmatpush3.msra.mxu1 %v4290_v59  ;;  %v4311_v59 = vld [vmem:[%s4836_s4 + $0x5] ss:$0 sm:$0xff] }
 0x2d1   :  { %2862 = vmatprep.subr.mxu1 %v5012_v49 }
 0x2d2   :  { %2863 = vmatpush3.msra.mxu1 %v4294_v58 }
 0x2d3   :  { %2864 = vmatprep.subr.mxu1 %v5012_v49 }
 0x2d4   :  { %2865 = vmatpush3.msra.mxu1 %v4298_v61 }
 0x2d5   :  { %2866 = vmatprep.subr.mxu1 %v5012_v49 }
 0x2d6   :  { %2867 = vmatpush3.msra.mxu1 %v4302_v44 }
 0x2d7   :  { %2868 = vmatprep.subr.mxu1 %v5012_v49 }
 0x37d   :  { %v693_v54 = vpop.f32.mrf.mxu1 }
 0x37e   :  { %v694_v58 = vadd.f32 %v693_v54, %v4311_v59 }
 0x37f   :  { %v2806_v57 = vpop.f32.mrf.mxu1 }
 0x380   :  { %v697_v1 = vmax.f32 %v694_v58, 0.0  ;;  %v5050_v57 = vld [vmem:[#allocation36_spill] sm:$0xff]  ;;  %v5051_v58 = vld [vmem:[#allocation38_spill] sm:$0xff] }
 0x382   :  { %2840 = vmatmul.mubr.f32.vlgmr.msra.gmra.mxu0 %v697_v1  ;;  %v5049_v1 = vld [vmem:[#allocation37_spill] sm:$0xff] }
 0x383   :  { %840 = vmatpush1.msra.mxu0 %v3727_v2  ;;  %903 = vmatprep.mubr.f32.mxu0 %v5012_v49  ;;  %v4347_v2 = vld [vmem:[#allocation4 + $0x310] sm:$0xff] }
 0x384   :  { %841 = vmatprep.subr.mxu0 %v3729_v3  ;;  %2869 = vmatpush3.msra.mxu1 %v4347_v2  ;;  %v4351_v3 = vld [vmem:[#allocation4 + $0x308] sm:$0xff] }
 0x385   :  { %842 = vmatpush1.msra.mxu0 %v3732_v4  ;;  %2870 = vmatprep.subr.mxu1 %v5012_v49  ;;  %v4355_v4 = vld [vmem:[#allocation4 + $0x300] sm:$0xff] }
 0x386   :  { %843 = vmatprep.subr.mxu0 %v3735_v5  ;;  %2871 = vmatpush3.msra.mxu1 %v4351_v3  ;;  %v4362_v5 = vld [vmem:[%s4836_s4 + $0x6] ss:$0 sm:$0xff] }
 0x387   :  { %844 = vmatpush1.msra.mxu0 %v3738_v6  ;;  %2872 = vmatprep.subr.mxu1 %v5012_v49 }
 0x388   :  { %845 = vmatprep.subr.mxu0 %v3741_v7  ;;  %2873 = vmatpush3.msra.mxu1 %v4355_v4 }
 0x389   :  { %846 = vmatpush1.msra.mxu0 %v3744_v8  ;;  %2877 = vmatprep.subr.mxu1 %v5012_v49 }
 0x38a   :  { %847 = vmatprep.subr.mxu0 %v3747_v9 }
 0x38b   :  { %848 = vmatpush1.msra.mxu0 %v3750_v10  ;;  %v5019_v10 = vld [vmem:[#allocation8_spill] sm:$0xff] }
 0x38c   :  { %849 = vmatprep.subr.mxu0 %v3753_v11  ;;  %v4402_v11 = vld [vmem:[%s4836_s4 + $0x7] ss:$0 sm:$0xff] }
 0x38d   :  { %850 = vmatpush1.msra.mxu0 %v3756_v12 }
 0x38e   :  { %851 = vmatprep.subr.mxu0 %v3759_v13 }
 0x38f   :  { %852 = vmatpush1.msra.mxu0 %v3762_v14 }
 0x390   :  { %853 = vmatprep.subr.mxu0 %v3769_v17  ;;  %v5022_v17 = vld [vmem:[#allocation11_spill] sm:$0xff] }
 0x391   :  { %854 = vmatpush1.msra.mxu0 %v3773_v18  ;;  %v5023_v18 = vld [vmem:[#allocation12_spill] sm:$0xff] }
 0x392   :  { %855 = vmatprep.subr.mxu0 %v3779_v20  ;;  %v5025_v20 = vld [vmem:[#allocation14_spill] sm:$0xff] }
 0x393   :  { %856 = vmatpush1.msra.mxu0 %v3783_v21  ;;  %v5026_v21 = vld [vmem:[#allocation15_spill] sm:$0xff] }
 0x394   :  { %857 = vmatprep.subr.mxu0 %v3789_v23  ;;  %v5028_v23 = vld [vmem:[#allocation17_spill] sm:$0xff] }
 0x395   :  { %858 = vmatpush1.msra.mxu0 %v3793_v24  ;;  %v5029_v24 = vld [vmem:[#allocation18_spill] sm:$0xff] }
 0x396   :  { %859 = vmatprep.subr.mxu0 %v3799_v26  ;;  %v5031_v26 = vld [vmem:[#allocation20_spill] sm:$0xff] }
 0x397   :  { %860 = vmatpush1.msra.mxu0 %v3803_v27  ;;  %v5032_v27 = vld [vmem:[#allocation21_spill] sm:$0xff] }
 0x398   :  { %861 = vmatprep.subr.mxu0 %v3809_v29  ;;  %v5034_v29 = vld [vmem:[#allocation41_spill] sm:$0xff] }
 0x399   :  { %862 = vmatpush1.msra.mxu0 %v3813_v30  ;;  %v5035_v30 = vld [vmem:[#allocation42_spill] sm:$0xff] }
 0x39a   :  { %863 = vmatprep.subr.mxu0 %v3819_v32  ;;  %v5036_v32 = vld [vmem:[#allocation23_spill] sm:$0xff] }
 0x39b   :  { %864 = vmatpush1.msra.mxu0 %v3823_v33 }
 0x39c   :  { %865 = vmatprep.subr.mxu0 %v3829_v35  ;;  %v5037_v35 = vld [vmem:[#allocation24_spill] sm:$0xff] }
 0x39d   :  { %866 = vmatpush1.msra.mxu0 %v3833_v36  ;;  %v5038_v36 = vld [vmem:[#allocation25_spill] sm:$0xff] }
 0x39e   :  { %867 = vmatprep.subr.mxu0 %v3839_v38  ;;  %v5040_v38 = vld [vmem:[#allocation27_spill] sm:$0xff] }
 0x39f   :  { %868 = vmatpush1.msra.mxu0 %v3843_v39  ;;  %v5041_v39 = vld [vmem:[#allocation28_spill] sm:$0xff] }
 0x3a0   :  { %869 = vmatprep.subr.mxu0 %v3849_v41  ;;  %v5043_v41 = vld [vmem:[#allocation30_spill] sm:$0xff] }
 0x3a1   :  { %870 = vmatpush1.msra.mxu0 %v3853_v42  ;;  %v5044_v42 = vld [vmem:[#allocation31_spill] sm:$0xff] }
 0x3a2   :  { %2912 = vmatprep.subr.mxu0 %v5012_v49 }
 0x442   :  { %v764_v6 = vpop.f32.mrf.mxu0 }
 0x443   :  { %v765_v7 = vadd.f32 %v764_v6, %v4362_v5  ;;  %v5052_v6 = vld [vmem:[#allocation39_spill] sm:$0xff] }
 0x444   :  { %v2841_v8 = vpop.f32.mrf.mxu0 }
 0x445   :  { %v768_v9 = vmax.f32 %v765_v7, 0.0  ;;  %v5053_v8 = vld [vmem:[#allocation40_spill] sm:$0xff] }
 0x447   :  { %2875 = vmatmul.mubr.f32.vlgmr.msra.gmra.mxu1 %v768_v9  ;;  %v5054_v9 = vld [vmem:[#allocation61_spill] sm:$0xff] }
 0x448   :  { %2878 = vmatpush3.msra.mxu1 %v3764_v15  ;;  %2909 = vmatprep.mubr.msk.f32.mxu1 %vm3686_vm0, %v5012_v49  ;;  %v5020_v15 = vld [vmem:[#allocation9_spill] sm:$0xff] }
 0x449   :  { %2879 = vmatprep.subr.mxu1 %v5012_v49 }
 0x44a   :  { %2880 = vmatpush3.msra.mxu1 %v3766_v16  ;;  %v5021_v16 = vld [vmem:[#allocation10_spill] sm:$0xff] }
 0x44b   :  { %2881 = vmatprep.subr.mxu1 %v5012_v49 }
 0x44c   :  { %2882 = vmatpush3.msra.mxu1 %v3776_v19  ;;  %v5024_v19 = vld [vmem:[#allocation13_spill] sm:$0xff] }
 0x44d   :  { %2883 = vmatprep.subr.mxu1 %v5012_v49 }
 0x44e   :  { %2884 = vmatpush3.msra.mxu1 %v3786_v22  ;;  %v5027_v22 = vld [vmem:[#allocation16_spill] sm:$0xff] }
 0x44f   :  { %2885 = vmatprep.subr.mxu1 %v5012_v49 }
 0x450   :  { %2886 = vmatpush3.msra.mxu1 %v3796_v25  ;;  %v5030_v25 = vld [vmem:[#allocation19_spill] sm:$0xff] }
 0x451   :  { %2887 = vmatprep.subr.mxu1 %v5012_v49 }
 0x452   :  { %2888 = vmatpush3.msra.mxu1 %v3806_v28  ;;  %v5033_v28 = vld [vmem:[#allocation22_spill] sm:$0xff] }
 0x453   :  { %2889 = vmatprep.subr.mxu1 %v5012_v49 }
 0x454   :  { %2890 = vmatpush3.msra.mxu1 %v3816_v31 }
 0x455   :  { %2891 = vmatprep.subr.mxu1 %v5012_v49 }
 0x456   :  { %2892 = vmatpush3.msra.mxu1 %v3826_v34 }
 0x457   :  { %2893 = vmatprep.subr.mxu1 %v5012_v49 }
 0x458   :  { %2894 = vmatpush3.msra.mxu1 %v3836_v37  ;;  %v5039_v37 = vld [vmem:[#allocation26_spill] sm:$0xff] }
 0x459   :  { %2895 = vmatprep.subr.mxu1 %v5012_v49 }
 0x45a   :  { %2896 = vmatpush3.msra.mxu1 %v3846_v40  ;;  %v5042_v40 = vld [vmem:[#allocation29_spill] sm:$0xff] }
 0x45b   :  { %2897 = vmatprep.subr.mxu1 %v5012_v49 }
 0x45c   :  { %2898 = vmatpush3.msra.mxu1 %v3856_v43  ;;  %v5045_v43 = vld [vmem:[#allocation32_spill] sm:$0xff] }
 0x45d   :  { %2899 = vmatprep.subr.mxu1 %v5012_v49 }
 0x45e   :  { %2900 = vmatpush3.msra.mxu1 %v3865_v45  ;;  %v5046_v45 = vld [vmem:[#allocation33_spill] sm:$0xff] }
 0x45f   :  { %2901 = vmatprep.subr.mxu1 %v5012_v49 }
 0x460   :  { %2902 = vmatpush3.msra.mxu1 %v3870_v46  ;;  %v5047_v46 = vld [vmem:[#allocation34_spill] sm:$0xff] }
 0x461   :  { %2903 = vmatprep.subr.mxu1 %v5012_v49 }
 0x462   :  { %2904 = vmatpush3.msra.mxu1 %v3875_v47 }
 0x463   :  { %2905 = vmatprep.subr.mxu1 %v5012_v49 }
 0x464   :  { %2906 = vmatpush3.msra.mxu1 %v3881_v48  ;;  %v5048_v48 = vld [vmem:[#allocation35_spill] sm:$0xff] }
 0x465   :  { %2907 = vmatprep.subr.mxu1 %v5012_v49 }
 0x466   :  { %2908 = vmatpush3.msra.mxu1 %v5019_v10  ;;  %v5055_v10 = vld [vmem:[#allocation62_spill] sm:$0xff] }
 0x467   :  { %2947 = vmatprep.subr.mxu1 %v5012_v49 }
 0x507   :  { %v835_v12 = vpop.f32.mrf.mxu1 }
 0x508   :  { %v836_v13 = vadd.f32 %v835_v12, %v4402_v11  ;;  %v5056_v12 = vld [vmem:[#allocation63_spill] sm:$0xff] }
 0x509   :  { %v2876_v14 = vpop.f32.mrf.mxu1 }
 0x50a   :  { %904 = vmatmul.mubr.f32.vlgmr.msra.gmra.mxu0 %v836_v13  ;;  %v5057_v13 = vld [vmem:[#allocation64_spill] sm:$0xff]  ;;  %v5058_v14 = vld [vmem:[#allocation65_spill] sm:$0xff] }
 0x50b   :  { %2913 = vmatpush3.msra.mxu0 %v5020_v15  ;;  %2944 = vmatprep.mubr.msk.f32.mxu0 %vm3686_vm0, %v5012_v49  ;;  %v5059_v15 = vld [vmem:[#allocation66_spill] sm:$0xff] }
 0x50c   :  { %2914 = vmatprep.subr.mxu0 %v5012_v49 }
 0x50d   :  { %2915 = vmatpush3.msra.mxu0 %v5021_v16  ;;  %v5060_v16 = vld [vmem:[#allocation67_spill] sm:$0xff] }
 0x50e   :  { %2916 = vmatprep.subr.mxu0 %v5012_v49 }
 0x50f   :  { %2917 = vmatpush3.msra.mxu0 %v5022_v17  ;;  %v5061_v17 = vld [vmem:[#allocation68_spill] sm:$0xff] }
 0x510   :  { %2918 = vmatprep.subr.mxu0 %v5012_v49 }
 0x511   :  { %2919 = vmatpush3.msra.mxu0 %v5023_v18  ;;  %v5062_v18 = vld [vmem:[#allocation69_spill] sm:$0xff] }
 0x512   :  { %2920 = vmatprep.subr.mxu0 %v5012_v49 }
 0x513   :  { %2921 = vmatpush3.msra.mxu0 %v5024_v19  ;;  %v5063_v19 = vld [vmem:[#allocation70_spill] sm:$0xff] }
 0x514   :  { %2922 = vmatprep.subr.mxu0 %v5012_v49 }
 0x515   :  { %2923 = vmatpush3.msra.mxu0 %v5025_v20  ;;  %v5064_v20 = vld [vmem:[#allocation71_spill] sm:$0xff] }
 0x516   :  { %2924 = vmatprep.subr.mxu0 %v5012_v49 }
 0x517   :  { %2925 = vmatpush3.msra.mxu0 %v5026_v21  ;;  %v5065_v21 = vld [vmem:[#allocation72_spill] sm:$0xff] }
 0x518   :  { %2926 = vmatprep.subr.mxu0 %v5012_v49 }
 0x519   :  { %2927 = vmatpush3.msra.mxu0 %v5027_v22  ;;  %v5066_v22 = vld [vmem:[#allocation73_spill] sm:$0xff] }
 0x51a   :  { %2928 = vmatprep.subr.mxu0 %v5012_v49 }
 0x51b   :  { %2929 = vmatpush3.msra.mxu0 %v5028_v23  ;;  %v5067_v23 = vld [vmem:[#allocation74_spill] sm:$0xff] }
 0x51c   :  { %2930 = vmatprep.subr.mxu0 %v5012_v49 }
 0x51d   :  { %2931 = vmatpush3.msra.mxu0 %v5029_v24  ;;  %v5068_v24 = vld [vmem:[#allocation75_spill] sm:$0xff] }
 0x51e   :  { %2932 = vmatprep.subr.mxu0 %v5012_v49 }
 0x51f   :  { %2933 = vmatpush3.msra.mxu0 %v5030_v25  ;;  %v5069_v25 = vld [vmem:[#allocation76_spill] sm:$0xff] }
 0x520   :  { %2934 = vmatprep.subr.mxu0 %v5012_v49 }
 0x521   :  { %2935 = vmatpush3.msra.mxu0 %v5031_v26 }
 0x522   :  { %2936 = vmatprep.subr.mxu0 %v5012_v49 }
 0x523   :  { %2937 = vmatpush3.msra.mxu0 %v5032_v27  ;;  %v5070_v27 = vld [vmem:[#allocation43_spill] sm:$0xff] }
 0x524   :  { %2938 = vmatprep.subr.mxu0 %v5012_v49 }
 0x525   :  { %2939 = vmatpush3.msra.mxu0 %v5033_v28 }
 0x526   :  { %2940 = vmatprep.subr.mxu0 %v5012_v49 }
 0x527   :  { %2941 = vmatpush3.msra.mxu0 %v5034_v29 }
 0x528   :  { %2942 = vmatprep.subr.mxu0 %v5012_v49 }
 0x529   :  { %2943 = vmatpush3.msra.mxu0 %v5035_v30 }
 0x52a   :  { %2982 = vmatprep.subr.mxu0 %v5012_v49 }
 0x5ca   :  { %v905_v31 = vpop.f32.mrf.mxu0 }
 0x5cb   :  { %v906_v33 = vadd.f32 %v905_v31, %v5036_v32  ;;  %v5071_v31 = vld [vmem:[#allocation44_spill] sm:$0xff] }
 0x5cc   :  { %v907_v47 = vpop.f32.mrf.mxu0 }
 0x5cd   :  { %v910_v34 = vmax.f32 %v906_v33, 0.0  ;;  %v908_v54 = vadd.f32 %v907_v47, %v5050_v57  ;;  %v5072_v33 = vld [vmem:[#allocation45_spill] sm:$0xff] }
 0x5ce   :  { %v5084_v47 = vld [vmem:[#allocation57_spill] sm:$0xff] }
 0x5cf   :  { %2910 = vmatmul.mubr.f32.vlgmr.msra.gmra.mxu1 %v910_v34  ;;  %v911_v7 = vmax.f32 %v908_v54, 0.0  ;;  %v5073_v34 = vld [vmem:[#allocation46_spill] sm:$0xff] }
 0x5d0   :  { %2948 = vmatpush3.msra.mxu1 %v5037_v35  ;;  %2979 = vmatprep.mubr.msk.f32.mxu1 %vm3686_vm0, %v5012_v49  ;;  %v5074_v35 = vld [vmem:[#allocation47_spill] sm:$0xff] }
 0x5d1   :  { %2949 = vmatprep.subr.mxu1 %v5012_v49 }
 0x5d2   :  { %2950 = vmatpush3.msra.mxu1 %v5038_v36  ;;  %v5075_v36 = vld [vmem:[#allocation48_spill] sm:$0xff] }
 0x5d3   :  { %2951 = vmatprep.subr.mxu1 %v5012_v49 }
 0x5d4   :  { %2952 = vmatpush3.msra.mxu1 %v5039_v37  ;;  %v5076_v37 = vld [vmem:[#allocation49_spill] sm:$0xff] }
 0x5d5   :  { %2953 = vmatprep.subr.mxu1 %v5012_v49 }
 0x5d6   :  { %2954 = vmatpush3.msra.mxu1 %v5040_v38  ;;  %v5077_v38 = vld [vmem:[#allocation50_spill] sm:$0xff] }
 0x5d7   :  { %2955 = vmatprep.subr.mxu1 %v5012_v49 }
 0x5d8   :  { %2956 = vmatpush3.msra.mxu1 %v5041_v39  ;;  %v5078_v39 = vld [vmem:[#allocation51_spill] sm:$0xff] }
 0x5d9   :  { %2957 = vmatprep.subr.mxu1 %v5012_v49 }
 0x5da   :  { %2958 = vmatpush3.msra.mxu1 %v5042_v40  ;;  %v5079_v40 = vld [vmem:[#allocation52_spill] sm:$0xff] }
 0x5db   :  { %2959 = vmatprep.subr.mxu1 %v5012_v49 }
 0x5dc   :  { %2960 = vmatpush3.msra.mxu1 %v5043_v41  ;;  %v5080_v41 = vld [vmem:[#allocation53_spill] sm:$0xff] }
 0x5dd   :  { %2961 = vmatprep.subr.mxu1 %v5012_v49 }
 0x5de   :  { %2962 = vmatpush3.msra.mxu1 %v5044_v42  ;;  %v5081_v42 = vld [vmem:[#allocation54_spill] sm:$0xff] }
 0x5df   :  { %2963 = vmatprep.subr.mxu1 %v5012_v49 }
 0x5e0   :  { %2964 = vmatpush3.msra.mxu1 %v5045_v43  ;;  %v5082_v43 = vld [vmem:[#allocation55_spill] sm:$0xff] }
 0x5e1   :  { %2965 = vmatprep.subr.mxu1 %v5012_v49 }
 0x5e2   :  { %2966 = vmatpush3.msra.mxu1 %v5046_v45  ;;  %v5083_v45 = vld [vmem:[#allocation56_spill] sm:$0xff] }
 0x5e3   :  { %2967 = vmatprep.subr.mxu1 %v5012_v49 }
 0x5e4   :  { %2968 = vmatpush3.msra.mxu1 %v5047_v46 }
 0x5e5   :  { %2969 = vmatprep.subr.mxu1 %v5012_v49 }
 0x5e6   :  { %2970 = vmatpush3.msra.mxu1 %v5048_v48  ;;  %v5085_v48 = vld [vmem:[#allocation58_spill] sm:$0xff] }
 0x5e7   :  { %2971 = vmatprep.subr.mxu1 %v5012_v49 }
 0x5e8   :  { %2972 = vmatpush3.msra.mxu1 %v5049_v1 }
 0x5e9   :  { %2973 = vmatprep.subr.mxu1 %v5012_v49 }
 0x5ea   :  { %2974 = vmatpush3.msra.mxu1 %v5051_v58  ;;  %v5086_v58 = vld [vmem:[#allocation59_spill] sm:$0xff] }
 0x5eb   :  { %2975 = vmatprep.subr.mxu1 %v5012_v49 }
 0x5ec   :  { %2976 = vmatpush3.msra.mxu1 %v5052_v6 }
 0x5ed   :  { %2977 = vmatprep.subr.mxu1 %v5012_v49 }
 0x5ee   :  { %2978 = vmatpush3.msra.mxu1 %v5053_v8  ;;  %v5088_v8 = vld [vmem:[#allocation77_spill] sm:$0xff] }
 0x5ef   :  { %2980 = vmatmul.mubr.f32.vlgmr.msra.gmra.mxu1 %v911_v7  ;;  %3017 = vmatprep.subr.mxu1 %v5012_v49  ;;  %v5087_v7 = vld [vmem:[#allocation60_spill] sm:$0xff] }
 0x5f0   :  { %3018 = vmatpush3.msra.mxu1 %v5054_v9  ;;  %3049 = vmatprep.mubr.msk.f32.mxu1 %vm3686_vm0, %v5012_v49  ;;  %v5089_v9 = vld [vmem:[#allocation78_spill] sm:$0xff] }
 0x5f1   :  { %3019 = vmatprep.subr.mxu1 %v5012_v49 }
 0x5f2   :  { %3020 = vmatpush3.msra.mxu1 %v5055_v10  ;;  %v5090_v10 = vld [vmem:[#allocation79_spill] sm:$0xff] }
 0x5f3   :  { %3021 = vmatprep.subr.mxu1 %v5012_v49 }
 0x5f4   :  { %3022 = vmatpush3.msra.mxu1 %v5056_v12  ;;  %v5091_v12 = vld [vmem:[#allocation80_spill] sm:$0xff] }
 0x5f5   :  { %3023 = vmatprep.subr.mxu1 %v5012_v49 }
 0x5f6   :  { %3024 = vmatpush3.msra.mxu1 %v5057_v13  ;;  %v5092_v13 = vld [vmem:[#allocation81_spill] sm:$0xff] }
 0x5f7   :  { %3025 = vmatprep.subr.mxu1 %v5012_v49 }
 0x5f8   :  { %3026 = vmatpush3.msra.mxu1 %v5058_v14  ;;  %v5093_v14 = vld [vmem:[#allocation82_spill] sm:$0xff] }
 0x5f9   :  { %3027 = vmatprep.subr.mxu1 %v5012_v49 }
 0x5fa   :  { %3028 = vmatpush3.msra.mxu1 %v5059_v15  ;;  %v5094_v15 = vld [vmem:[#allocation83_spill] sm:$0xff] }
 0x5fb   :  { %3029 = vmatprep.subr.mxu1 %v5012_v49 }
 0x5fc   :  { %3030 = vmatpush3.msra.mxu1 %v5060_v16  ;;  %v5095_v16 = vld [vmem:[#allocation84_spill] sm:$0xff] }
 0x5fd   :  { %3031 = vmatprep.subr.mxu1 %v5012_v49 }
 0x5fe   :  { %3032 = vmatpush3.msra.mxu1 %v5061_v17  ;;  %v5096_v17 = vld [vmem:[#allocation85_spill] sm:$0xff] }
 0x5ff   :  { %3033 = vmatprep.subr.mxu1 %v5012_v49 }
 0x600   :  { %3034 = vmatpush3.msra.mxu1 %v5062_v18  ;;  %v5097_v18 = vld [vmem:[#allocation86_spill] sm:$0xff] }
 0x601   :  { %3035 = vmatprep.subr.mxu1 %v5012_v49 }
 0x602   :  { %3036 = vmatpush3.msra.mxu1 %v5063_v19  ;;  %v5098_v19 = vld [vmem:[#allocation87_spill] sm:$0xff] }
 0x603   :  { %3037 = vmatprep.subr.mxu1 %v5012_v49 }
 0x604   :  { %3038 = vmatpush3.msra.mxu1 %v5064_v20  ;;  %v5099_v20 = vld [vmem:[#allocation88_spill] sm:$0xff] }
 0x605   :  { %3039 = vmatprep.subr.mxu1 %v5012_v49 }
 0x606   :  { %3040 = vmatpush3.msra.mxu1 %v5065_v21  ;;  %v5100_v21 = vld [vmem:[#allocation89_spill] sm:$0xff] }
 0x607   :  { %3041 = vmatprep.subr.mxu1 %v5012_v49 }
 0x608   :  { %3042 = vmatpush3.msra.mxu1 %v5066_v22  ;;  %v3484_v22 = vld [vmem:[#allocation2 + $0xf8] sm:$0xff] }
 0x609   :  { %3043 = vmatprep.subr.mxu1 %v5012_v49 }
 0x60a   :  { %3044 = vmatpush3.msra.mxu1 %v5067_v23 }
 0x60b   :  { %3045 = vmatprep.subr.mxu1 %v5012_v49 }
 0x60c   :  { %3046 = vmatpush3.msra.mxu1 %v5068_v24 }
 0x60d   :  { %3047 = vmatprep.subr.mxu1 %v5012_v49 }
 0x60e   :  { %3048 = vmatpush3.msra.mxu1 %v5069_v25 }
 0x60f   :  { %3087 = vmatprep.subr.mxu1 %v5012_v49 }
 0x68f   :  { %v978_v26 = vpop.f32.mrf.mxu1 }
 0x690   :  { %v979_v28 = vadd.f32 %v978_v26, %v5070_v27 }
 0x691   :  { %v2911_v29 = vpop.f32.mrf.mxu1 }
 0x692   :  { %v982_v30 = vmax.f32 %v979_v28, 0.0 }
 0x694   :  { %2945 = vmatmul.mubr.f32.vlgmr.msra.gmra.mxu0 %v982_v30 }
 0x695   :  { %2983 = vmatpush3.msra.mxu0 %v5071_v31  ;;  %3014 = vmatprep.mubr.msk.f32.mxu0 %vm3686_vm0, %v5012_v49 }
 0x696   :  { %2984 = vmatprep.subr.mxu0 %v5012_v49 }
 0x697   :  { %2985 = vmatpush3.msra.mxu0 %v5072_v33 }
 0x698   :  { %2986 = vmatprep.subr.mxu0 %v5012_v49 }
 0x699   :  { %2987 = vmatpush3.msra.mxu0 %v5073_v34 }
 0x69a   :  { %2988 = vmatprep.subr.mxu0 %v5012_v49 }
 0x69b   :  { %2989 = vmatpush3.msra.mxu0 %v5074_v35 }
 0x69c   :  { %2990 = vmatprep.subr.mxu0 %v5012_v49 }
 0x69d   :  { %2991 = vmatpush3.msra.mxu0 %v5075_v36 }
 0x69e   :  { %2992 = vmatprep.subr.mxu0 %v5012_v49 }
 0x69f   :  { %2993 = vmatpush3.msra.mxu0 %v5076_v37 }
 0x6a0   :  { %2994 = vmatprep.subr.mxu0 %v5012_v49 }
 0x6a1   :  { %2995 = vmatpush3.msra.mxu0 %v5077_v38  ;;  %v3487_v38 = vld [vmem:[#allocation2 + $0xe0] sm:$0xff] }
 0x6a2   :  { %2996 = vmatprep.subr.mxu0 %v5012_v49 }
 0x6a3   :  { %2997 = vmatpush3.msra.mxu0 %v5078_v39  ;;  %v3489_v39 = vld [vmem:[#allocation2 + $0xd0] sm:$0xff] }
 0x6a4   :  { %2998 = vmatprep.subr.mxu0 %v5012_v49 }
 0x6a5   :  { %2999 = vmatpush3.msra.mxu0 %v5079_v40  ;;  %v3491_v40 = vld [vmem:[#allocation2 + $0xc0] sm:$0xff] }
 0x6a6   :  { %3000 = vmatprep.subr.mxu0 %v5012_v49 }
 0x6a7   :  { %3001 = vmatpush3.msra.mxu0 %v5080_v41  ;;  %v3493_v41 = vld [vmem:[#allocation2 + $0xb0] sm:$0xff] }
 0x6a8   :  { %3002 = vmatprep.subr.mxu0 %v5012_v49 }
 0x6a9   :  { %3003 = vmatpush3.msra.mxu0 %v5081_v42  ;;  %v3494_v42 = vld [vmem:[#allocation2 + $0xa8] sm:$0xff] }
 0x6aa   :  { %3004 = vmatprep.subr.mxu0 %v5012_v49 }
 0x6ab   :  { %3005 = vmatpush3.msra.mxu0 %v5082_v43  ;;  %v3495_v43 = vld [vmem:[#allocation2 + $0xa0] sm:$0xff] }
 0x6ac   :  { %3006 = vmatprep.subr.mxu0 %v5012_v49 }
 0x6ad   :  { %3007 = vmatpush3.msra.mxu0 %v5083_v45  ;;  %v3496_v45 = vld [vmem:[#allocation2 + $0x98] sm:$0xff] }
 0x6ae   :  { %3008 = vmatprep.subr.mxu0 %v5012_v49 }
 0x6af   :  { %v1119_v46 = vpop.f32.mrf.mxu1  ;;  %3009 = vmatpush3.msra.mxu0 %v5084_v47  ;;  %v3498_v47 = vld [vmem:[#allocation2 + $0x88] sm:$0xff] }
 0x6b0   :  { %v1120_v1 = vadd.f32 %v1119_v46, %v5085_v48  ;;  %3010 = vmatprep.subr.mxu0 %v5012_v49  ;;  %v3497_v46 = vld [vmem:[#allocation2 + $0x90] sm:$0xff]  ;;  %v3499_v48 = vld [vmem:[#allocation2 + $0x80] sm:$0xff] }
 0x6b1   :  { %v2981_v54 = vpop.f32.mrf.mxu1  ;;  %3011 = vmatpush3.msra.mxu0 %v5086_v58  ;;  %v3502_v58 = vld [vmem:[#allocation2 + $0x68] sm:$0xff] }
 0x6b2   :  { %v1123_v6 = vmax.f32 %v1120_v1, 0.0  ;;  %3012 = vmatprep.subr.mxu0 %v5012_v49  ;;  %v3500_v1 = vld [vmem:[#allocation2 + $0x78] sm:$0xff]  ;;  %v3501_v54 = vld [vmem:[#allocation2 + $0x70] sm:$0xff] }
 0x6b3   :  { %3013 = vmatpush3.msra.mxu0 %v5087_v7  ;;  %v3504_v7 = vld [vmem:[#allocation2 + $0x58] sm:$0xff] }
 0x6b4   :  { %3015 = vmatmul.mubr.f32.vlgmr.msra.gmra.mxu0 %v1123_v6  ;;  %3052 = vmatprep.subr.mxu0 %v5012_v49  ;;  %v3503_v6 = vld [vmem:[#allocation2 + $0x60] sm:$0xff] }
 0x6b5   :  { %3053 = vmatpush3.msra.mxu0 %v5088_v8  ;;  %3084 = vmatprep.mubr.msk.f32.mxu0 %vm3686_vm0, %v5012_v49  ;;  %v3505_v8 = vld [vmem:[#allocation2 + $0x50] sm:$0xff] }
 0x6b6   :  { %3054 = vmatprep.subr.mxu0 %v5012_v49 }
 0x6b7   :  { %3055 = vmatpush3.msra.mxu0 %v5089_v9  ;;  %v3506_v9 = vld [vmem:[#allocation2 + $0x48] sm:$0xff] }
 0x6b8   :  { %3056 = vmatprep.subr.mxu0 %v5012_v49 }
 0x6b9   :  { %3057 = vmatpush3.msra.mxu0 %v5090_v10  ;;  %v3507_v10 = vld [vmem:[#allocation2 + $0x40] sm:$0xff] }
 0x6ba   :  { %3058 = vmatprep.subr.mxu0 %v5012_v49 }
 0x6bb   :  { %3059 = vmatpush3.msra.mxu0 %v5091_v12  ;;  %v3508_v12 = vld [vmem:[#allocation2 + $0x38] sm:$0xff] }
 0x6bc   :  { %3060 = vmatprep.subr.mxu0 %v5012_v49 }
 0x6bd   :  { %3061 = vmatpush3.msra.mxu0 %v5092_v13  ;;  %v3509_v13 = vld [vmem:[#allocation2 + $0x30] sm:$0xff] }
 0x6be   :  { %3062 = vmatprep.subr.mxu0 %v5012_v49 }
 0x6bf   :  { %3063 = vmatpush3.msra.mxu0 %v5093_v14  ;;  %v3510_v14 = vld [vmem:[#allocation2 + $0x28] sm:$0xff] }
 0x6c0   :  { %3064 = vmatprep.subr.mxu0 %v5012_v49 }
 0x6c1   :  { %3065 = vmatpush3.msra.mxu0 %v5094_v15  ;;  %v3511_v15 = vld [vmem:[#allocation2 + $0x20] sm:$0xff] }
 0x6c2   :  { %3066 = vmatprep.subr.mxu0 %v5012_v49 }
 0x6c3   :  { %3067 = vmatpush3.msra.mxu0 %v5095_v16  ;;  %v3512_v16 = vld [vmem:[#allocation2 + $0x18] sm:$0xff] }
 0x6c4   :  { %3068 = vmatprep.subr.mxu0 %v5012_v49 }
 0x6c5   :  { %3069 = vmatpush3.msra.mxu0 %v5096_v17  ;;  %v3513_v17 = vld [vmem:[#allocation2 + $0x10] sm:$0xff] }
 0x6c6   :  { %3070 = vmatprep.subr.mxu0 %v5012_v49 }
 0x6c7   :  { %3071 = vmatpush3.msra.mxu0 %v5097_v18  ;;  %v3514_v18 = vld [vmem:[#allocation2 + $0x8] sm:$0xff] }
 0x6c8   :  { %3072 = vmatprep.subr.mxu0 %v5012_v49 }
 0x6c9   :  { %3073 = vmatpush3.msra.mxu0 %v5098_v19  ;;  %v3515_v19 = vld [vmem:[#allocation2] sm:$0xff] }
 0x6ca   :  { %3074 = vmatprep.subr.mxu0 %v5012_v49 }
 0x6cb   :  { %3075 = vmatpush3.msra.mxu0 %v5099_v20 }
 0x6cc   :  { %3076 = vmatprep.subr.mxu0 %v5012_v49 }
 0x6cd   :  { %3077 = vmatpush3.msra.mxu0 %v5100_v21 }
 0x6ce   :  { %3078 = vmatprep.subr.mxu0 %v5012_v49 }
 0x6cf   :  { %3079 = vmatpush3.msra.mxu0 %v4244_v56 }
 0x6d0   :  { %3080 = vmatprep.subr.mxu0 %v5012_v49 }
 0x6d1   :  { %3081 = vmatpush3.msra.mxu0 %v4248_v60 }
 0x6d2   :  { %3082 = vmatprep.subr.mxu0 %v5012_v49 }
 0x6d3   :  { %3083 = vmatpush3.msra.mxu0 %v4252_v53  ;;  %v5103_v53 = vld [vmem:[#allocation92_spill] sm:$0xff] }
 0x6d4   :  { %1415 = vmatprep.subr.mxu0 %v3484_v22 }
 0x754   :  { %v1049_v23 = vpop.f32.mrf.mxu0 }
 0x755   :  { %v1050_v60 = vadd.f32 %v1049_v23, %v4239_v0  ;;  %v5101_v0 = vld [vmem:[#allocation90_spill] sm:$0xff] }
 0x756   :  { %v2946_v24 = vpop.f32.mrf.mxu0 }
 0x757   :  { %v3516_v24 = vld [vmem:[#allocation4 + $0x78] sm:$0xff] }
 0x774   :  { %v1190_v25 = vpop.f32.mrf.mxu0 }
 0x775   :  { %v1191_v26 = vadd.f32 %v1190_v25, %v4233_v55  ;;  %v5102_v55 = vld [vmem:[#allocation91_spill] sm:$0xff]  ;;  %v3517_v25 = vld [vmem:[#allocation4 + $0x70] sm:$0xff] }
 0x776   :  { %v3016_v27 = vpop.f32.mrf.mxu0 }
 0x777   :  { %v1194_v28 = vrot.slane %v1191_v26, 4  ;;  %v3519_v27 = vld [vmem:[#allocation4 + $0x60] sm:$0xff] }
 0x779   :  { %v1195_v29 = vadd.f32 %v1194_v28, %v1191_v26  ;;  %v3521_v28 = vld [vmem:[#allocation4 + $0x50] sm:$0xff] }
 0x77b   :  { %v1196_v30 = vrot.slane %v1195_v29, 2 }
 0x77d   :  { %v1197_v56 = vadd.f32 %v1196_v30, %v1195_v29  ;;  %v3522_v29 = vld [vmem:[#allocation4 + $0x48] sm:$0xff]  ;;  %v3523_v30 = vld [vmem:[#allocation4 + $0x40] sm:$0xff] }
 0x77f   :  { %v1198_v31 = vrot.slane %v1197_v56, 1 }
 0x781   :  { %v1199_v33 = vadd.f32 %v1198_v31, %v1197_v56  ;;  %v3524_v56 = vld [vmem:[#allocation4 + $0x38] sm:$0xff]  ;;  %v3525_v31 = vld [vmem:[#allocation4 + $0x30] sm:$0xff] }
 0x783   :  { %v1200_v34 = vsub.f32 %v1199_v33, %v1191_v26  ;;  %v3518_v26 = vld [vmem:[#allocation4 + $0x68] sm:$0xff] }
 0x784   :  { %v3526_v33 = vld [vmem:[#allocation4 + $0x28] sm:$0xff] }
 0x785   :  { %v1201_v35 = vadd.f32 %v1200_v34, %v1050_v60  ;;  %v3527_v60 = vld [vmem:[#allocation4 + $0x20] sm:$0xff]  ;;  %v3528_v34 = vld [vmem:[#allocation4 + $0x18] sm:$0xff] }
 0x787   :  { %v1202_v36 = vmul.f32 0.125, %v1201_v35  ;;  %v3529_v35 = vld [vmem:[#allocation4 + $0x10] sm:$0xff] }
 0x789   :  { %3050 = vmatmul.mubr.f32.vlgmr.msra.gmra.mxu1 %v1202_v36  ;;  %v3530_v36 = vld [vmem:[#allocation4 + $0x8] sm:$0xff] }
 0x78a   :  { %3088 = vmatpush3.msra.mxu1 %v4255_v50  ;;  %3119 = vmatprep.mubr.msk.f32.mxu1 %vm3686_vm0, %v5012_v49  ;;  %v5104_v50 = vld [vmem:[#allocation93_spill] sm:$0xff] }
 0x78b   :  { %3089 = vmatprep.subr.mxu1 %v5012_v49 }
 0x78c   :  { %3090 = vmatpush3.msra.mxu1 %v4257_v51  ;;  %v5105_v51 = vld [vmem:[#allocation94_spill] sm:$0xff] }
 0x78d   :  { %3091 = vmatprep.subr.mxu1 %v5012_v49 }
 0x78e   :  { %3092 = vmatpush3.msra.mxu1 %v4262_v52  ;;  %v5106_v52 = vld [vmem:[#allocation95_spill] sm:$0xff] }
 0x78f   :  { %3093 = vmatprep.subr.mxu1 %v5012_v49 }
 0x790   :  { %3094 = vmatpush3.msra.mxu1 %v4266_v62 }
 0x791   :  { %3095 = vmatprep.subr.mxu1 %v5012_v49 }
 0x792   :  { %3096 = vmatpush3.msra.mxu1 %v4270_v63 }
 0x793   :  { %3097 = vmatprep.subr.mxu1 %v5012_v49 }
 0x794   :  { %3098 = vmatpush3.msra.mxu1 %v5101_v0  ;;  %v3531_v0 = vld [vmem:[#allocation4] sm:$0xff] }
 0x795   :  { %3099 = vmatprep.subr.mxu1 %v5012_v49 }
 0x796   :  { %3100 = vmatpush3.msra.mxu1 %v5102_v55 }
 0x797   :  { %3101 = vmatprep.subr.mxu1 %v5012_v49 }
 0x798   :  { %3102 = vmatpush3.msra.mxu1 %v5103_v53 }
 0x799   :  { %3103 = vmatprep.subr.mxu1 %v5012_v49 }
 0x79a   :  { %3104 = vmatpush3.msra.mxu1 %v5104_v50 }
 0x79b   :  { %3105 = vmatprep.subr.mxu1 %v5012_v49 }
 0x79c   :  { %3106 = vmatpush3.msra.mxu1 %v5105_v51  ;;  %v3532_v51 = vld [vmem:[#allocation4 + $0xf8] sm:$0xff] }
 0x79d   :  { %3107 = vmatprep.subr.mxu1 %v5012_v49 }
 0x79e   :  { %3108 = vmatpush3.msra.mxu1 %v5106_v52  ;;  %v3533_v52 = vld [vmem:[#allocation4 + $0xf0] sm:$0xff] }
 0x79f   :  { %3109 = vmatprep.subr.mxu1 %v5012_v49 }
 0x7a0   :  { %3110 = vmatpush3.msra.mxu1 %v4298_v61 }
 0x7a1   :  { %3111 = vmatprep.subr.mxu1 %v5012_v49 }
 0x7a2   :  { %3112 = vmatpush3.msra.mxu1 %v4302_v44  ;;  %v3485_v44 = vld [vmem:[#allocation2 + $0xf0] sm:$0xff] }
 0x7a3   :  { %3113 = vmatprep.subr.mxu1 %v5012_v49 }
 0x7a4   :  { %3114 = vmatpush3.msra.mxu1 %v4347_v2  ;;  %v3486_v2 = vld [vmem:[#allocation2 + $0xe8] sm:$0xff] }
 0x7a5   :  { %3115 = vmatprep.subr.mxu1 %v5012_v49 }
 0x7a6   :  { %3116 = vmatpush3.msra.mxu1 %v4351_v3  ;;  %v3488_v3 = vld [vmem:[#allocation2 + $0xd8] sm:$0xff] }
 0x7a7   :  { %3117 = vmatprep.subr.mxu1 %v5012_v49 }
 0x7a8   :  { %3118 = vmatpush3.msra.mxu1 %v4355_v4  ;;  %v3490_v4 = vld [vmem:[#allocation2 + $0xc8] sm:$0xff] }
 0x7a9   :  { %3122 = vmatprep.subr.mxu1 %v5012_v49 }
 0x849   :  { %v1269_v62 = vpop.f32.mrf.mxu1 }
 0x84a   :  { %v1270_v63 = vadd.f32 %v1269_v62, %v4311_v59  ;;  %v3492_v59 = vld [vmem:[#allocation2 + $0xb8] sm:$0xff]  ;;  %v3534_v62 = vld [vmem:[#allocation4 + $0xe8] sm:$0xff] }
 0x84b   :  { %v3051_v61 = vpop.f32.mrf.mxu1 }
 0x84c   :  { %v1273_v37 = vmax.f32 %v1270_v63, 0.0  ;;  %v3535_v63 = vld [vmem:[#allocation4 + $0xe0] sm:$0xff]  ;;  %v3537_v61 = vld [vmem:[#allocation4 + $0xd0] sm:$0xff] }
 0x84e   :  { %3085 = vmatmul.mubr.f32.vlgmr.msra.gmra.mxu0 %v1273_v37  ;;  %v3538_v37 = vld [vmem:[#allocation4 + $0xc8] sm:$0xff] }
 0x84f   :  { %1416 = vmatpush1.msra.mxu0 %v3485_v44  ;;  %1479 = vmatprep.mubr.f32.mxu0 %v5012_v49  ;;  %v3539_v44 = vld [vmem:[#allocation4 + $0xc0] sm:$0xff] }
 0x850   :  { %1417 = vmatprep.subr.mxu0 %v3486_v2  ;;  %v3540_v2 = vld [vmem:[#allocation4 + $0xb8] sm:$0xff] }
 0x851   :  { %1418 = vmatpush1.msra.mxu0 %v3487_v38  ;;  %v3541_v38 = vld [vmem:[#allocation4 + $0xb0] sm:$0xff] }
 0x852   :  { %1419 = vmatprep.subr.mxu0 %v3488_v3  ;;  %v3542_v3 = vld [vmem:[#allocation4 + $0xa8] sm:$0xff] }
 0x853   :  { %1420 = vmatpush1.msra.mxu0 %v3489_v39  ;;  %v3543_v39 = vld [vmem:[#allocation4 + $0xa0] sm:$0xff] }
 0x854   :  { %1421 = vmatprep.subr.mxu0 %v3490_v4  ;;  %v3544_v4 = vld [vmem:[#allocation4 + $0x98] sm:$0xff] }
 0x855   :  { %1422 = vmatpush1.msra.mxu0 %v3491_v40  ;;  %v3545_v40 = vld [vmem:[#allocation4 + $0x90] sm:$0xff] }
 0x856   :  { %1423 = vmatprep.subr.mxu0 %v3492_v59  ;;  %v3546_v59 = vld [vmem:[#allocation4 + $0x88] sm:$0xff] }
 0x857   :  { %1424 = vmatpush1.msra.mxu0 %v3493_v41  ;;  %v3547_v41 = vld [vmem:[#allocation4 + $0x80] sm:$0xff] }
 0x858   :  { %1425 = vmatprep.subr.mxu0 %v3494_v42 }
 0x859   :  { %1426 = vmatpush1.msra.mxu0 %v3495_v43 }
 0x85a   :  { %1427 = vmatprep.subr.mxu0 %v3496_v45 }
 0x85b   :  { %1428 = vmatpush1.msra.mxu0 %v3497_v46  ;;  %v3548_v46 = vld [vmem:[#allocation4 + $0x178] sm:$0xff] }
 0x85c   :  { %1429 = vmatprep.subr.mxu0 %v3498_v47  ;;  %v3549_v47 = vld [vmem:[#allocation4 + $0x170] sm:$0xff] }
 0x85d   :  { %1430 = vmatpush1.msra.mxu0 %v3499_v48  ;;  %v3550_v48 = vld [vmem:[#allocation4 + $0x168] sm:$0xff] }
 0x85e   :  { %1431 = vmatprep.subr.mxu0 %v3500_v1  ;;  %v3551_v1 = vld [vmem:[#allocation4 + $0x160] sm:$0xff] }
 0x85f   :  { %1432 = vmatpush1.msra.mxu0 %v3501_v54  ;;  %v3553_v54 = vld [vmem:[#allocation4 + $0x150] sm:$0xff] }
 0x860   :  { %1433 = vmatprep.subr.mxu0 %v3502_v58  ;;  %v3554_v58 = vld [vmem:[#allocation4 + $0x148] sm:$0xff] }
 0x861   :  { %1434 = vmatpush1.msra.mxu0 %v3503_v6  ;;  %v3555_v6 = vld [vmem:[#allocation4 + $0x140] sm:$0xff] }
 0x862   :  { %1435 = vmatprep.subr.mxu0 %v3504_v7  ;;  %v3556_v7 = vld [vmem:[#allocation4 + $0x138] sm:$0xff] }
 0x863   :  { %1436 = vmatpush1.msra.mxu0 %v3505_v8  ;;  %v3557_v8 = vld [vmem:[#allocation4 + $0x130] sm:$0xff] }
 0x864   :  { %1437 = vmatprep.subr.mxu0 %v3506_v9  ;;  %v3558_v9 = vld [vmem:[#allocation4 + $0x128] sm:$0xff] }
 0x865   :  { %1438 = vmatpush1.msra.mxu0 %v3507_v10 }
 0x866   :  { %1439 = vmatprep.subr.mxu0 %v3508_v12  ;;  %v3559_v12 = vld [vmem:[#allocation4 + $0x120] sm:$0xff] }
 0x867   :  { %1440 = vmatpush1.msra.mxu0 %v3509_v13  ;;  %v3560_v13 = vld [vmem:[#allocation4 + $0x118] sm:$0xff] }
 0x868   :  { %1441 = vmatprep.subr.mxu0 %v3510_v14 }
 0x869   :  { %1442 = vmatpush1.msra.mxu0 %v3511_v15  ;;  %v3561_v15 = vld [vmem:[#allocation4 + $0x110] sm:$0xff] }
 0x86a   :  { %1443 = vmatprep.subr.mxu0 %v3512_v16  ;;  %v3562_v16 = vld [vmem:[#allocation4 + $0x108] sm:$0xff] }
 0x86b   :  { %1444 = vmatpush1.msra.mxu0 %v3513_v17 }
 0x86c   :  { %1445 = vmatprep.subr.mxu0 %v3514_v18  ;;  %v3563_v18 = vld [vmem:[#allocation4 + $0x100] sm:$0xff] }
 0x86d   :  { %1446 = vmatpush1.msra.mxu0 %v3515_v19  ;;  %v3564_v19 = vld [vmem:[#allocation4 + $0x278] sm:$0xff] }
 0x86e   :  { %3157 = vmatprep.subr.mxu0 %v5012_v49 }
 0x90e   :  { %v1340_v20 = vpop.f32.mrf.mxu0 }
 0x90f   :  { %v1341_v21 = vadd.f32 %v1340_v20, %v4362_v5  ;;  %v3520_v5 = vld [vmem:[#allocation4 + $0x58] sm:$0xff]  ;;  %v3566_v20 = vld [vmem:[#allocation4 + $0x268] sm:$0xff] }
 0x910   :  { %v3086_v22 = vpop.f32.mrf.mxu0 }
 0x911   :  { %v1344_v23 = vmax.f32 %v1341_v21, 0.0  ;;  %v3567_v21 = vld [vmem:[#allocation4 + $0x260] sm:$0xff]  ;;  %v3568_v22 = vld [vmem:[#allocation4 + $0x258] sm:$0xff] }
 0x913   :  { %3120 = vmatmul.mubr.f32.vlgmr.msra.gmra.mxu1 %v1344_v23  ;;  %v3569_v23 = vld [vmem:[#allocation4 + $0x250] sm:$0xff] }
 0x914   :  { %3123 = vmatpush3.msra.mxu1 %v3516_v24  ;;  %3154 = vmatprep.mubr.msk.f32.mxu1 %vm3686_vm0, %v5012_v49  ;;  %v3570_v24 = vld [vmem:[#allocation4 + $0x248] sm:$0xff] }
 0x915   :  { %3124 = vmatprep.subr.mxu1 %v5012_v49 }
 0x916   :  { %3125 = vmatpush3.msra.mxu1 %v3517_v25  ;;  %v3571_v25 = vld [vmem:[#allocation4 + $0x240] sm:$0xff] }
 0x917   :  { %3126 = vmatprep.subr.mxu1 %v5012_v49 }
 0x918   :  { %3127 = vmatpush3.msra.mxu1 %v3518_v26  ;;  %v3572_v26 = vld [vmem:[#allocation4 + $0x238] sm:$0xff] }
 0x919   :  { %3128 = vmatprep.subr.mxu1 %v5012_v49 }
 0x91a   :  { %3129 = vmatpush3.msra.mxu1 %v3519_v27  ;;  %v3573_v27 = vld [vmem:[#allocation4 + $0x230] sm:$0xff] }
 0x91b   :  { %3130 = vmatprep.subr.mxu1 %v5012_v49 }
 0x91c   :  { %3131 = vmatpush3.msra.mxu1 %v3520_v5  ;;  %v3574_v5 = vld [vmem:[#allocation4 + $0x228] sm:$0xff] }
 0x91d   :  { %3132 = vmatprep.subr.mxu1 %v5012_v49 }
 0x91e   :  { %3133 = vmatpush3.msra.mxu1 %v3521_v28  ;;  %v3575_v28 = vld [vmem:[#allocation4 + $0x220] sm:$0xff] }
 0x91f   :  { %3134 = vmatprep.subr.mxu1 %v5012_v49 }
 0x920   :  { %3135 = vmatpush3.msra.mxu1 %v3522_v29  ;;  %v3576_v29 = vld [vmem:[#allocation4 + $0x218] sm:$0xff] }
 0x921   :  { %3136 = vmatprep.subr.mxu1 %v5012_v49 }
 0x922   :  { %3137 = vmatpush3.msra.mxu1 %v3523_v30  ;;  %v3577_v30 = vld [vmem:[#allocation4 + $0x210] sm:$0xff] }
 0x923   :  { %3138 = vmatprep.subr.mxu1 %v5012_v49 }
 0x924   :  { %3139 = vmatpush3.msra.mxu1 %v3524_v56  ;;  %v3578_v56 = vld [vmem:[#allocation4 + $0x208] sm:$0xff] }
 0x925   :  { %3140 = vmatprep.subr.mxu1 %v5012_v49 }
 0x926   :  { %3141 = vmatpush3.msra.mxu1 %v3525_v31  ;;  %v3579_v31 = vld [vmem:[#allocation4 + $0x200] sm:$0xff] }
 0x927   :  { %3142 = vmatprep.subr.mxu1 %v5012_v49 }
 0x928   :  { %3143 = vmatpush3.msra.mxu1 %v3526_v33 }
 0x929   :  { %3144 = vmatprep.subr.mxu1 %v5012_v49 }
 0x92a   :  { %3145 = vmatpush3.msra.mxu1 %v3527_v60  ;;  %v3580_v60 = vld [vmem:[%s4836_s4 + $0x1] ss:$0 sm:$0xff] }
 0x92b   :  { %3146 = vmatprep.subr.mxu1 %v5012_v49 }
 0x92c   :  { %3147 = vmatpush3.msra.mxu1 %v3528_v34 }
 0x92d   :  { %3148 = vmatprep.subr.mxu1 %v5012_v49 }
 0x92e   :  { %3149 = vmatpush3.msra.mxu1 %v3529_v35 }
 0x92f   :  { %3150 = vmatprep.subr.mxu1 %v5012_v49 }
 0x930   :  { %3151 = vmatpush3.msra.mxu1 %v3530_v36 }
 0x931   :  { %3152 = vmatprep.subr.mxu1 %v5012_v49 }
 0x932   :  { %3153 = vmatpush3.msra.mxu1 %v3531_v0  ;;  %v3581_v0 = vld [vmem:[#allocation4 + $0x1f8] sm:$0xff] }
 0x933   :  { %3192 = vmatprep.subr.mxu1 %v5012_v49 }
 0x9d3   :  { %v1411_v55 = vpop.f32.mrf.mxu1 }
 0x9d4   :  { %v1412_v53 = vadd.f32 %v1411_v55, %v4402_v11  ;;  %v3536_v11 = vld [vmem:[#allocation4 + $0xd8] sm:$0xff]  ;;  %v3582_v55 = vld [vmem:[#allocation4 + $0x1f0] sm:$0xff] }
 0x9d5   :  { %v3121_v50 = vpop.f32.mrf.mxu1 }
 0x9d6   :  { %1480 = vmatmul.mubr.f32.vlgmr.msra.gmra.mxu0 %v1412_v53  ;;  %v3583_v53 = vld [vmem:[#allocation4 + $0x1e8] sm:$0xff]  ;;  %v3584_v50 = vld [vmem:[#allocation4 + $0x1e0] sm:$0xff] }
 0x9d7   :  { %3158 = vmatpush3.msra.mxu0 %v3532_v51  ;;  %3189 = vmatprep.mubr.msk.f32.mxu0 %vm3686_vm0, %v5012_v49  ;;  %v3585_v51 = vld [vmem:[#allocation4 + $0x1d8] sm:$0xff] }
 0x9d8   :  { %3159 = vmatprep.subr.mxu0 %v5012_v49 }
 0x9d9   :  { %3160 = vmatpush3.msra.mxu0 %v3533_v52  ;;  %v3586_v52 = vld [vmem:[#allocation4 + $0x1d0] sm:$0xff] }
 0x9da   :  { %3161 = vmatprep.subr.mxu0 %v5012_v49 }
 0x9db   :  { %3162 = vmatpush3.msra.mxu0 %v3534_v62  ;;  %v3587_v62 = vld [vmem:[#allocation4 + $0x1c8] sm:$0xff] }
 0x9dc   :  { %3163 = vmatprep.subr.mxu0 %v5012_v49 }
 0x9dd   :  { %3164 = vmatpush3.msra.mxu0 %v3535_v63  ;;  %v3588_v63 = vld [vmem:[#allocation4 + $0x1c0] sm:$0xff] }
 0x9de   :  { %3165 = vmatprep.subr.mxu0 %v5012_v49 }
 0x9df   :  { %3166 = vmatpush3.msra.mxu0 %v3536_v11  ;;  %v3589_v11 = vld [vmem:[#allocation4 + $0x1b8] sm:$0xff] }
 0x9e0   :  { %3167 = vmatprep.subr.mxu0 %v5012_v49 }
 0x9e1   :  { %3168 = vmatpush3.msra.mxu0 %v3537_v61  ;;  %v3590_v61 = vld [vmem:[#allocation4 + $0x1b0] sm:$0xff] }
 0x9e2   :  { %3169 = vmatprep.subr.mxu0 %v5012_v49 }
 0x9e3   :  { %3170 = vmatpush3.msra.mxu0 %v3538_v37  ;;  %v3591_v37 = vld [vmem:[#allocation4 + $0x1a8] sm:$0xff] }
 0x9e4   :  { %3171 = vmatprep.subr.mxu0 %v5012_v49 }
 0x9e5   :  { %3172 = vmatpush3.msra.mxu0 %v3539_v44  ;;  %v3592_v44 = vld [vmem:[#allocation4 + $0x1a0] sm:$0xff] }
 0x9e6   :  { %3173 = vmatprep.subr.mxu0 %v5012_v49 }
 0x9e7   :  { %3174 = vmatpush3.msra.mxu0 %v3540_v2  ;;  %v3593_v2 = vld [vmem:[#allocation4 + $0x198] sm:$0xff] }
 0x9e8   :  { %3175 = vmatprep.subr.mxu0 %v5012_v49 }
 0x9e9   :  { %3176 = vmatpush3.msra.mxu0 %v3541_v38 }
 0x9ea   :  { %3177 = vmatprep.subr.mxu0 %v5012_v49 }
 0x9eb   :  { %3178 = vmatpush3.msra.mxu0 %v3542_v3  ;;  %v3594_v3 = vld [vmem:[#allocation4 + $0x190] sm:$0xff] }
 0x9ec   :  { %3179 = vmatprep.subr.mxu0 %v5012_v49 }
 0x9ed   :  { %3180 = vmatpush3.msra.mxu0 %v3543_v39  ;;  %v3595_v39 = vld [vmem:[%s4836_s4 + $0x3] ss:$0 sm:$0xff] }
 0x9ee   :  { %3181 = vmatprep.subr.mxu0 %v5012_v49 }
 0x9ef   :  { %3182 = vmatpush3.msra.mxu0 %v3544_v4 }
 0x9f0   :  { %3183 = vmatprep.subr.mxu0 %v5012_v49 }
 0x9f1   :  { %3184 = vmatpush3.msra.mxu0 %v3545_v40 }
 0x9f2   :  { %3185 = vmatprep.subr.mxu0 %v5012_v49 }
 0x9f3   :  { %3186 = vmatpush3.msra.mxu0 %v3546_v59  ;;  %v3596_v59 = vld [vmem:[#allocation4 + $0x188] sm:$0xff] }
 0x9f4   :  { %3187 = vmatprep.subr.mxu0 %v5012_v49 }
 0x9f5   :  { %3188 = vmatpush3.msra.mxu0 %v3547_v41 }
 0x9f6   :  { %3227 = vmatprep.subr.mxu0 %v5012_v49 }
 0xa96   :  { %v1481_v42 = vpop.f32.mrf.mxu0 }
 0xa97   :  { %v1482_v43 = vadd.f32 %v1481_v42, %v5036_v32  ;;  %v3552_v32 = vld [vmem:[#allocation4 + $0x158] sm:$0xff]  ;;  %v3597_v42 = vld [vmem:[#allocation4 + $0x180] sm:$0xff] }
 0xa98   :  { %v1483_v10 = vpop.f32.mrf.mxu0 }
 0xa99   :  { %v1486_v45 = vmax.f32 %v1482_v43, 0.0  ;;  %v1484_v14 = vadd.f32 %v1483_v10, %v5050_v57  ;;  %v3565_v57 = vld [vmem:[#allocation4 + $0x270] sm:$0xff]  ;;  %v3598_v43 = vld [vmem:[#allocation4 + $0x2f8] sm:$0xff] }
 0xa9a   :  { %v3611_v10 = vld [vmem:[#allocation4 + $0x290] sm:$0xff] }
 0xa9b   :  { %3155 = vmatmul.mubr.f32.vlgmr.msra.gmra.mxu1 %v1486_v45  ;;  %v1487_v17 = vmax.f32 %v1484_v14, 0.0  ;;  %v3599_v45 = vld [vmem:[#allocation4 + $0x2f0] sm:$0xff] }
 0xa9c   :  { %3193 = vmatpush3.msra.mxu1 %v3548_v46  ;;  %3224 = vmatprep.mubr.msk.f32.mxu1 %vm3686_vm0, %v5012_v49  ;;  %v3600_v46 = vld [vmem:[#allocation4 + $0x2e8] sm:$0xff] }
 0xa9d   :  { %3194 = vmatprep.subr.mxu1 %v5012_v49 }
 0xa9e   :  { %3195 = vmatpush3.msra.mxu1 %v3549_v47  ;;  %v3601_v47 = vld [vmem:[#allocation4 + $0x2e0] sm:$0xff] }
 0xa9f   :  { %3196 = vmatprep.subr.mxu1 %v5012_v49 }
 0xaa0   :  { %3197 = vmatpush3.msra.mxu1 %v3550_v48  ;;  %v3602_v48 = vld [vmem:[#allocation4 + $0x2d8] sm:$0xff] }
 0xaa1   :  { %3198 = vmatprep.subr.mxu1 %v5012_v49 }
 0xaa2   :  { %3199 = vmatpush3.msra.mxu1 %v3551_v1  ;;  %v3603_v1 = vld [vmem:[#allocation4 + $0x2d0] sm:$0xff] }
 0xaa3   :  { %3200 = vmatprep.subr.mxu1 %v5012_v49 }
 0xaa4   :  { %3201 = vmatpush3.msra.mxu1 %v3552_v32  ;;  %v3604_v32 = vld [vmem:[#allocation4 + $0x2c8] sm:$0xff] }
 0xaa5   :  { %3202 = vmatprep.subr.mxu1 %v5012_v49 }
 0xaa6   :  { %3203 = vmatpush3.msra.mxu1 %v3553_v54  ;;  %v3605_v54 = vld [vmem:[#allocation4 + $0x2c0] sm:$0xff] }
 0xaa7   :  { %3204 = vmatprep.subr.mxu1 %v5012_v49 }
 0xaa8   :  { %3205 = vmatpush3.msra.mxu1 %v3554_v58  ;;  %v3606_v58 = vld [vmem:[#allocation4 + $0x2b8] sm:$0xff] }
 0xaa9   :  { %3206 = vmatprep.subr.mxu1 %v5012_v49 }
 0xaaa   :  { %3207 = vmatpush3.msra.mxu1 %v3555_v6  ;;  %v3607_v6 = vld [vmem:[#allocation4 + $0x2b0] sm:$0xff] }
 0xaab   :  { %3208 = vmatprep.subr.mxu1 %v5012_v49 }
 0xaac   :  { %3209 = vmatpush3.msra.mxu1 %v3556_v7  ;;  %v3608_v7 = vld [vmem:[#allocation4 + $0x2a8] sm:$0xff] }
 0xaad   :  { %3210 = vmatprep.subr.mxu1 %v5012_v49 }
 0xaae   :  { %3211 = vmatpush3.msra.mxu1 %v3557_v8  ;;  %v3609_v8 = vld [vmem:[#allocation4 + $0x2a0] sm:$0xff] }
 0xaaf   :  { %3212 = vmatprep.subr.mxu1 %v5012_v49 }
 0xab0   :  { %3213 = vmatpush3.msra.mxu1 %v3558_v9  ;;  %v3610_v9 = vld [vmem:[#allocation4 + $0x298] sm:$0xff] }
 0xab1   :  { %3214 = vmatprep.subr.mxu1 %v5012_v49 }
 0xab2   :  { %3215 = vmatpush3.msra.mxu1 %v3559_v12  ;;  %v3612_v12 = vld [vmem:[#allocation4 + $0x288] sm:$0xff] }
 0xab3   :  { %3216 = vmatprep.subr.mxu1 %v5012_v49 }
 0xab4   :  { %3217 = vmatpush3.msra.mxu1 %v3560_v13  ;;  %v3613_v13 = vld [vmem:[#allocation4 + $0x280] sm:$0xff] }
 0xab5   :  { %3218 = vmatprep.subr.mxu1 %v5012_v49 }
 0xab6   :  { %3219 = vmatpush3.msra.mxu1 %v3561_v15 }
 0xab7   :  { %3220 = vmatprep.subr.mxu1 %v5012_v49 }
 0xab8   :  { %3221 = vmatpush3.msra.mxu1 %v3562_v16 }
 0xab9   :  { %3222 = vmatprep.subr.mxu1 %v5012_v49 }
 0xaba   :  { %3223 = vmatpush3.msra.mxu1 %v3563_v18 }
 0xabb   :  { %3225 = vmatmul.mubr.f32.vlgmr.msra.gmra.mxu1 %v1487_v17  ;;  %3262 = vmatprep.subr.mxu1 %v5012_v49  ;;  %v3614_v17 = vld [vmem:[%s4836_s4 + $0x4] ss:$0 sm:$0xff] }
 0xabc   :  { %3263 = vmatpush3.msra.mxu1 %v3564_v19  ;;  %3294 = vmatprep.mubr.msk.f32.mxu1 %vm3686_vm0, %v5012_v49 }
 0xabd   :  { %3264 = vmatprep.subr.mxu1 %v5012_v49 }
 0xabe   :  { %3265 = vmatpush3.msra.mxu1 %v3565_v57 }
 0xabf   :  { %3266 = vmatprep.subr.mxu1 %v5012_v49 }
 0xac0   :  { %3267 = vmatpush3.msra.mxu1 %v3566_v20 }
 0xac1   :  { %3268 = vmatprep.subr.mxu1 %v5012_v49 }
 0xac2   :  { %3269 = vmatpush3.msra.mxu1 %v3567_v21 }
 0xac3   :  { %3270 = vmatprep.subr.mxu1 %v5012_v49 }
 0xac4   :  { %3271 = vmatpush3.msra.mxu1 %v3568_v22 }
 0xac5   :  { %3272 = vmatprep.subr.mxu1 %v5012_v49 }
 0xac6   :  { %3273 = vmatpush3.msra.mxu1 %v3569_v23 }
 0xac7   :  { %3274 = vmatprep.subr.mxu1 %v5012_v49 }
 0xac8   :  { %3275 = vmatpush3.msra.mxu1 %v3570_v24 }
 0xac9   :  { %3276 = vmatprep.subr.mxu1 %v5012_v49 }
 0xaca   :  { %3277 = vmatpush3.msra.mxu1 %v3571_v25  ;;  %v3615_v25 = vld [vmem:[%s4836_s4 + $0x2] ss:$0 sm:$0xff] }
 0xacb   :  { %3278 = vmatprep.subr.mxu1 %v5012_v49 }
 0xacc   :  { %3279 = vmatpush3.msra.mxu1 %v3572_v26 }
 0xacd   :  { %3280 = vmatprep.subr.mxu1 %v5012_v49 }
 0xace   :  { %3281 = vmatpush3.msra.mxu1 %v3573_v27 }
 0xacf   :  { %3282 = vmatprep.subr.mxu1 %v5012_v49 }
 0xad0   :  { %3283 = vmatpush3.msra.mxu1 %v3574_v5 }
 0xad1   :  { %3284 = vmatprep.subr.mxu1 %v5012_v49 }
 0xad2   :  { %3285 = vmatpush3.msra.mxu1 %v3575_v28 }
 0xad3   :  { %3286 = vmatprep.subr.mxu1 %v5012_v49 }
 0xad4   :  { %3287 = vmatpush3.msra.mxu1 %v3576_v29  ;;  %v3616_v29 = vld [vmem:[#allocation4 + $0x378] sm:$0xff] }
 0xad5   :  { %3288 = vmatprep.subr.mxu1 %v5012_v49 }
 0xad6   :  { %3289 = vmatpush3.msra.mxu1 %v3577_v30  ;;  %v3617_v30 = vld [vmem:[#allocation4 + $0x370] sm:$0xff] }
 0xad7   :  { %3290 = vmatprep.subr.mxu1 %v5012_v49 }
 0xad8   :  { %3291 = vmatpush3.msra.mxu1 %v3578_v56  ;;  %v3618_v56 = vld [vmem:[#allocation4 + $0x368] sm:$0xff] }
 0xad9   :  { %3292 = vmatprep.subr.mxu1 %v5012_v49 }
 0xada   :  { %3293 = vmatpush3.msra.mxu1 %v3579_v31  ;;  %v3619_v31 = vld [vmem:[#allocation4 + $0x360] sm:$0xff] }
 0xadb   :  { %3332 = vmatprep.subr.mxu1 %v5012_v49 }
 0xb5b   :  { %v1554_v33 = vpop.f32.mrf.mxu1 }
 0xb5c   :  { %v1555_v34 = vadd.f32 %v3580_v60, %v1554_v33  ;;  %v3620_v33 = vld [vmem:[#allocation4 + $0x358] sm:$0xff]  ;;  %v3621_v60 = vld [vmem:[#allocation4 + $0x350] sm:$0xff] }
 0xb5d   :  { %v3156_v35 = vpop.f32.mrf.mxu1 }
 0xb5e   :  { %v1558_v36 = vmax.f32 %v1555_v34, 0.0  ;;  %v3622_v34 = vld [vmem:[#allocation4 + $0x348] sm:$0xff]  ;;  %v3623_v35 = vld [vmem:[#allocation4 + $0x340] sm:$0xff] }
 0xb60   :  { %3190 = vmatmul.mubr.f32.vlgmr.msra.gmra.mxu0 %v1558_v36  ;;  %v3624_v36 = vld [vmem:[#allocation4 + $0x338] sm:$0xff] }
 0xb61   :  { %3228 = vmatpush3.msra.mxu0 %v3581_v0  ;;  %3259 = vmatprep.mubr.msk.f32.mxu0 %vm3686_vm0, %v5012_v49  ;;  %v3625_v0 = vld [vmem:[#allocation4 + $0x330] sm:$0xff] }
 0xb62   :  { %3229 = vmatprep.subr.mxu0 %v5012_v49 }
 0xb63   :  { %3230 = vmatpush3.msra.mxu0 %v3582_v55  ;;  %v3626_v55 = vld [vmem:[#allocation4 + $0x328] sm:$0xff] }
 0xb64   :  { %3231 = vmatprep.subr.mxu0 %v5012_v49 }
 0xb65   :  { %3232 = vmatpush3.msra.mxu0 %v3583_v53  ;;  %v3627_v53 = vld [vmem:[#allocation4 + $0x320] sm:$0xff] }
 0xb66   :  { %3233 = vmatprep.subr.mxu0 %v5012_v49 }
 0xb67   :  { %3234 = vmatpush3.msra.mxu0 %v3584_v50  ;;  %v3628_v50 = vld [vmem:[#allocation4 + $0x318] sm:$0xff] }
 0xb68   :  { %3235 = vmatprep.subr.mxu0 %v5012_v49 }
 0xb69   :  { %3236 = vmatpush3.msra.mxu0 %v3585_v51  ;;  %v3629_v51 = vld [vmem:[#allocation4 + $0x310] sm:$0xff] }
 0xb6a   :  { %3237 = vmatprep.subr.mxu0 %v5012_v49 }
 0xb6b   :  { %3238 = vmatpush3.msra.mxu0 %v3586_v52  ;;  %v3630_v52 = vld [vmem:[#allocation4 + $0x308] sm:$0xff] }
 0xb6c   :  { %3239 = vmatprep.subr.mxu0 %v5012_v49 }
 0xb6d   :  { %3240 = vmatpush3.msra.mxu0 %v3587_v62  ;;  %v3631_v62 = vld [vmem:[#allocation4 + $0x300] sm:$0xff] }
 0xb6e   :  { %3241 = vmatprep.subr.mxu0 %v5012_v49 }
 0xb6f   :  { %3242 = vmatpush3.msra.mxu0 %v3588_v63 }
 0xb70   :  { %3243 = vmatprep.subr.mxu0 %v5012_v49 }
 0xb71   :  { %3244 = vmatpush3.msra.mxu0 %v3589_v11  ;;  %v3632_v11 = vld [vmem:[%s4836_s4 + $0x5] ss:$0 sm:$0xff] }
 0xb72   :  { %3245 = vmatprep.subr.mxu0 %v5012_v49 }
 0xb73   :  { %3246 = vmatpush3.msra.mxu0 %v3590_v61 }
 0xb74   :  { %3247 = vmatprep.subr.mxu0 %v5012_v49 }
 0xb75   :  { %3248 = vmatpush3.msra.mxu0 %v3591_v37 }
 0xb76   :  { %3249 = vmatprep.subr.mxu0 %v5012_v49 }
 0xb77   :  { %3250 = vmatpush3.msra.mxu0 %v3592_v44 }
 0xb78   :  { %3251 = vmatprep.subr.mxu0 %v5012_v49 }
 0xb79   :  { %3252 = vmatpush3.msra.mxu0 %v3593_v2  ;;  %v207_v2 = vld [vmem:[#allocation4 + $0x3f8] sm:$0xff] }
 0xb7a   :  { %3253 = vmatprep.subr.mxu0 %v5012_v49 }
 0xb7b   :  { %v1695_v38 = vpop.f32.mrf.mxu1  ;;  %3254 = vmatpush3.msra.mxu0 %v3594_v3  ;;  %v205_v3 = vld [vmem:[#allocation4 + $0x3e8] sm:$0xff] }
 0xb7c   :  { %v1696_v4 = vadd.f32 %v3595_v39, %v1695_v38  ;;  %3255 = vmatprep.subr.mxu0 %v5012_v49  ;;  %v206_v38 = vld [vmem:[#allocation4 + $0x3f0] sm:$0xff]  ;;  %v204_v39 = vld [vmem:[#allocation4 + $0x3e0] sm:$0xff] }
 0xb7d   :  { %v3226_v40 = vpop.f32.mrf.mxu1  ;;  %3256 = vmatpush3.msra.mxu0 %v3596_v59  ;;  %v201_v59 = vld [vmem:[#allocation4 + $0x3c8] sm:$0xff] }
 0xb7e   :  { %v1699_v41 = vmax.f32 %v1696_v4, 0.0  ;;  %3257 = vmatprep.subr.mxu0 %v5012_v49  ;;  %v203_v4 = vld [vmem:[#allocation4 + $0x3d8] sm:$0xff]  ;;  %v202_v40 = vld [vmem:[#allocation4 + $0x3d0] sm:$0xff] }
 0xb7f   :  { %3258 = vmatpush3.msra.mxu0 %v3597_v42  ;;  %v199_v42 = vld [vmem:[#allocation4 + $0x3b8] sm:$0xff] }
 0xb80   :  { %3260 = vmatmul.mubr.f32.vlgmr.msra.gmra.mxu0 %v1699_v41  ;;  %3297 = vmatprep.subr.mxu0 %v5012_v49  ;;  %v200_v41 = vld [vmem:[#allocation4 + $0x3c0] sm:$0xff] }
 0xb81   :  { %3298 = vmatpush3.msra.mxu0 %v3598_v43  ;;  %3329 = vmatprep.mubr.msk.f32.mxu0 %vm3686_vm0, %v5012_v49  ;;  %v198_v43 = vld [vmem:[#allocation4 + $0x3b0] sm:$0xff] }
 0xb82   :  { %3299 = vmatprep.subr.mxu0 %v5012_v49 }
 0xb83   :  { %3300 = vmatpush3.msra.mxu0 %v3599_v45  ;;  %v197_v45 = vld [vmem:[#allocation4 + $0x3a8] sm:$0xff] }
 0xb84   :  { %3301 = vmatprep.subr.mxu0 %v5012_v49 }
 0xb85   :  { %3302 = vmatpush3.msra.mxu0 %v3600_v46  ;;  %v196_v46 = vld [vmem:[#allocation4 + $0x3a0] sm:$0xff] }
 0xb86   :  { %3303 = vmatprep.subr.mxu0 %v5012_v49 }
 0xb87   :  { %3304 = vmatpush3.msra.mxu0 %v3601_v47  ;;  %v195_v47 = vld [vmem:[#allocation4 + $0x398] sm:$0xff] }
 0xb88   :  { %3305 = vmatprep.subr.mxu0 %v5012_v49 }
 0xb89   :  { %3306 = vmatpush3.msra.mxu0 %v3602_v48  ;;  %v194_v48 = vld [vmem:[#allocation4 + $0x390] sm:$0xff] }
 0xb8a   :  { %3307 = vmatprep.subr.mxu0 %v5012_v49 }
 0xb8b   :  { %3308 = vmatpush3.msra.mxu0 %v3603_v1 }
 0xb8c   :  { %3309 = vmatprep.subr.mxu0 %v5012_v49 }
 0xb8d   :  { %3310 = vmatpush3.msra.mxu0 %v3604_v32  ;;  %v3633_v32 = vld [vmem:[%s4836_s4 + $0x6] ss:$0 sm:$0xff] }
 0xb8e   :  { %3311 = vmatprep.subr.mxu0 %v5012_v49 }
 0xb8f   :  { %3312 = vmatpush3.msra.mxu0 %v3605_v54 }
 0xb90   :  { %3313 = vmatprep.subr.mxu0 %v5012_v49 }
 0xb91   :  { %3314 = vmatpush3.msra.mxu0 %v3606_v58 }
 0xb92   :  { %3315 = vmatprep.subr.mxu0 %v5012_v49 }
 0xb93   :  { %3316 = vmatpush3.msra.mxu0 %v3607_v6 }
 0xb94   :  { %3317 = vmatprep.subr.mxu0 %v5012_v49 }
 0xb95   :  { %3318 = vmatpush3.msra.mxu0 %v3608_v7  ;;  %v193_v7 = vld [vmem:[#allocation4 + $0x388] sm:$0xff] }
 0xb96   :  { %3319 = vmatprep.subr.mxu0 %v5012_v49 }
 0xb97   :  { %3320 = vmatpush3.msra.mxu0 %v3609_v8  ;;  %v192_v8 = vld [vmem:[#allocation4 + $0x380] sm:$0xff] }
 0xb98   :  { %3321 = vmatprep.subr.mxu0 %v5012_v49 }
 0xb99   :  { %3322 = vmatpush3.msra.mxu0 %v3610_v9  ;;  %v223_v9 = vld [vmem:[#allocation4 + $0x478] sm:$0xff] }
 0xb9a   :  { %3323 = vmatprep.subr.mxu0 %v5012_v49 }
 0xb9b   :  { %3324 = vmatpush3.msra.mxu0 %v3611_v10  ;;  %v222_v10 = vld [vmem:[#allocation4 + $0x470] sm:$0xff] }
 0xb9c   :  { %3325 = vmatprep.subr.mxu0 %v5012_v49 }
 0xb9d   :  { %3326 = vmatpush3.msra.mxu0 %v3612_v12  ;;  %v221_v12 = vld [vmem:[#allocation4 + $0x468] sm:$0xff] }
 0xb9e   :  { %3327 = vmatprep.subr.mxu0 %v5012_v49 }
 0xb9f   :  { %3328 = vmatpush3.msra.mxu0 %v3613_v13  ;;  %v220_v13 = vld [vmem:[#allocation4 + $0x460] sm:$0xff] }
 0xba0   :  { %3367 = vmatprep.subr.mxu0 %v5012_v49 }
 0xc20   :  { %v1625_v14 = vpop.f32.mrf.mxu0 }
 0xc21   :  { %v1626_v26 = vadd.f32 %v3615_v25, %v1625_v14  ;;  %v219_v14 = vld [vmem:[#allocation4 + $0x458] sm:$0xff] }
 0xc22   :  { %v3191_v15 = vpop.f32.mrf.mxu0 }
 0xc23   :  { %v218_v15 = vld [vmem:[#allocation4 + $0x450] sm:$0xff] }
 0xc40   :  { %v1766_v16 = vpop.f32.mrf.mxu0 }
 0xc41   :  { %v1767_v18 = vadd.f32 %v3614_v17, %v1766_v16  ;;  %v217_v16 = vld [vmem:[#allocation4 + $0x448] sm:$0xff]  ;;  %v216_v17 = vld [vmem:[#allocation4 + $0x440] sm:$0xff] }
 0xc42   :  { %v3261_v19 = vpop.f32.mrf.mxu0 }
 0xc43   :  { %v1770_v57 = vrot.slane %v1767_v18, 4  ;;  %v214_v19 = vld [vmem:[#allocation4 + $0x430] sm:$0xff] }
 0xc45   :  { %v1771_v20 = vadd.f32 %v1770_v57, %v1767_v18  ;;  %v213_v57 = vld [vmem:[#allocation4 + $0x428] sm:$0xff] }
 0xc47   :  { %v1772_v21 = vrot.slane %v1771_v20, 2 }
 0xc49   :  { %v1773_v22 = vadd.f32 %v1772_v21, %v1771_v20  ;;  %v212_v20 = vld [vmem:[#allocation4 + $0x420] sm:$0xff]  ;;  %v211_v21 = vld [vmem:[#allocation4 + $0x418] sm:$0xff] }
 0xc4b   :  { %v1774_v23 = vrot.slane %v1773_v22, 1 }
 0xc4d   :  { %v1775_v24 = vadd.f32 %v1774_v23, %v1773_v22  ;;  %v3634_v23 = vld [vmem:[%s4836_s4 + $0x7] ss:$0 sm:$0xff] }
 0xc4f   :  { %v1776_v27 = vsub.f32 %v1775_v24, %v1767_v18  ;;  %v215_v18 = vld [vmem:[#allocation4 + $0x438] sm:$0xff] }
 0xc51   :  { %v1777_v5 = vadd.f32 %v1776_v27, %v1626_v26  ;;  %v210_v26 = vld [vmem:[#allocation4 + $0x410] sm:$0xff]  ;;  %v209_v27 = vld [vmem:[#allocation4 + $0x408] sm:$0xff] }
 0xc53   :  { %v1778_v28 = vmul.f32 0.125, %v1777_v5  ;;  %v208_v5 = vld [vmem:[#allocation4 + $0x400] sm:$0xff] }
 0xc55   :  { %3295 = vmatmul.mubr.f32.vlgmr.msra.gmra.mxu1 %v1778_v28  ;;  %v239_v28 = vld [vmem:[#allocation4 + $0x4f8] sm:$0xff] }
 0xc56   :  { %3333 = vmatpush3.msra.mxu1 %v3616_v29  ;;  %3364 = vmatprep.mubr.msk.f32.mxu1 %vm3686_vm0, %v5012_v49  ;;  %v238_v29 = vld [vmem:[#allocation4 + $0x4f0] sm:$0xff] }
 0xc57   :  { %3334 = vmatprep.subr.mxu1 %v5012_v49 }
 0xc58   :  { %3335 = vmatpush3.msra.mxu1 %v3617_v30  ;;  %v237_v30 = vld [vmem:[#allocation4 + $0x4e8] sm:$0xff] }
 0xc59   :  { %3336 = vmatprep.subr.mxu1 %v5012_v49 }
 0xc5a   :  { %3337 = vmatpush3.msra.mxu1 %v3618_v56  ;;  %v236_v56 = vld [vmem:[#allocation4 + $0x4e0] sm:$0xff] }
 0xc5b   :  { %3338 = vmatprep.subr.mxu1 %v5012_v49 }
 0xc5c   :  { %3339 = vmatpush3.msra.mxu1 %v3619_v31  ;;  %v235_v31 = vld [vmem:[#allocation4 + $0x4d8] sm:$0xff] }
 0xc5d   :  { %3340 = vmatprep.subr.mxu1 %v5012_v49 }
 0xc5e   :  { %3341 = vmatpush3.msra.mxu1 %v3620_v33  ;;  %v234_v33 = vld [vmem:[#allocation4 + $0x4d0] sm:$0xff] }
 0xc5f   :  { %3342 = vmatprep.subr.mxu1 %v5012_v49 }
 0xc60   :  { %3343 = vmatpush3.msra.mxu1 %v3621_v60  ;;  %v233_v60 = vld [vmem:[#allocation4 + $0x4c8] sm:$0xff] }
 0xc61   :  { %3344 = vmatprep.subr.mxu1 %v5012_v49 }
 0xc62   :  { %3345 = vmatpush3.msra.mxu1 %v3622_v34  ;;  %v232_v34 = vld [vmem:[#allocation4 + $0x4c0] sm:$0xff] }
 0xc63   :  { %3346 = vmatprep.subr.mxu1 %v5012_v49 }
 0xc64   :  { %3347 = vmatpush3.msra.mxu1 %v3623_v35  ;;  %v231_v35 = vld [vmem:[#allocation4 + $0x4b8] sm:$0xff] }
 0xc65   :  { %3348 = vmatprep.subr.mxu1 %v5012_v49 }
 0xc66   :  { %3349 = vmatpush3.msra.mxu1 %v3624_v36  ;;  %v230_v36 = vld [vmem:[#allocation4 + $0x4b0] sm:$0xff] }
 0xc67   :  { %3350 = vmatprep.subr.mxu1 %v5012_v49 }
 0xc68   :  { %3351 = vmatpush3.msra.mxu1 %v3625_v0  ;;  %v229_v0 = vld [vmem:[#allocation4 + $0x4a8] sm:$0xff] }
 0xc69   :  { %3352 = vmatprep.subr.mxu1 %v5012_v49 }
 0xc6a   :  { %3353 = vmatpush3.msra.mxu1 %v3626_v55  ;;  %v228_v55 = vld [vmem:[#allocation4 + $0x4a0] sm:$0xff] }
 0xc6b   :  { %3354 = vmatprep.subr.mxu1 %v5012_v49 }
 0xc6c   :  { %3355 = vmatpush3.msra.mxu1 %v3627_v53  ;;  %v227_v53 = vld [vmem:[#allocation4 + $0x498] sm:$0xff] }
 0xc6d   :  { %3356 = vmatprep.subr.mxu1 %v5012_v49 }
 0xc6e   :  { %3357 = vmatpush3.msra.mxu1 %v3628_v50  ;;  %v2222_v50 = vld [vmem:[%s4833_s1] ss:$0 sm:$0xff] }
 0xc6f   :  { %3358 = vmatprep.subr.mxu1 %v5012_v49 }
 0xc70   :  { %3359 = vmatpush3.msra.mxu1 %v3629_v51 }
 0xc71   :  { %3360 = vmatprep.subr.mxu1 %v5012_v49 }
 0xc72   :  { %3361 = vmatpush3.msra.mxu1 %v3630_v52 }
 0xc73   :  { %3362 = vmatprep.subr.mxu1 %v5012_v49 }
 0xc74   :  { %3363 = vmatpush3.msra.mxu1 %v3631_v62 }
 0xc75   :  { %3402 = vmatprep.subr.mxu1 %v5012_v49 }
 0xd15   :  { %v1845_v63 = vpop.f32.mrf.mxu1 }
 0xd16   :  { %v1846_v61 = vadd.f32 %v3632_v11, %v1845_v63  ;;  %v226_v11 = vld [vmem:[#allocation4 + $0x490] sm:$0xff] }
 0xd17   :  { %v3296_v37 = vpop.f32.mrf.mxu1 }
 0xd18   :  { %v1849_v44 = vmax.f32 %v1846_v61, 0.0  ;;  %v225_v61 = vld [vmem:[#allocation4 + $0x488] sm:$0xff]  ;;  %v224_v37 = vld [vmem:[#allocation4 + $0x480] sm:$0xff] }
 0xd1a   :  { %3330 = vmatmul.mubr.f32.vlgmr.msra.gmra.mxu0 %v1849_v44  ;;  %v259_v44 = vld [vmem:[%s4836_s4 + $0x10] ss:$0 sm:$0xff] }
 0xd1b   :  { %3399 = vmatprep.mubr.msk.f32.mxu0 %vm3686_vm0, %v5012_v49  ;;  %3368 = vmatpush3.msra.mxu0 %v207_v2 }
 0xd1c   :  { %3369 = vmatprep.subr.mxu0 %v5012_v49 }
 0xd1d   :  { %3370 = vmatpush3.msra.mxu0 %v206_v38 }
 0xd1e   :  { %3371 = vmatprep.subr.mxu0 %v5012_v49 }
 0xd1f   :  { %3372 = vmatpush3.msra.mxu0 %v205_v3 }
 0xd20   :  { %3373 = vmatprep.subr.mxu0 %v5012_v49 }
 0xd21   :  { %3374 = vmatpush3.msra.mxu0 %v204_v39 }
 0xd22   :  { %3375 = vmatprep.subr.mxu0 %v5012_v49 }
 0xd23   :  { %3376 = vmatpush3.msra.mxu0 %v203_v4  ;;  %v260_v4 = vld [vmem:[%s4836_s4 + $0x11] ss:$0 sm:$0xff] }
 0xd24   :  { %3377 = vmatprep.subr.mxu0 %v5012_v49 }
 0xd25   :  { %3378 = vmatpush3.msra.mxu0 %v202_v40 }
 0xd26   :  { %3379 = vmatprep.subr.mxu0 %v5012_v49 }
 0xd27   :  { %3380 = vmatpush3.msra.mxu0 %v201_v59 }
 0xd28   :  { %3381 = vmatprep.subr.mxu0 %v5012_v49 }
 0xd29   :  { %3382 = vmatpush3.msra.mxu0 %v200_v41 }
 0xd2a   :  { %3383 = vmatprep.subr.mxu0 %v5012_v49 }
 0xd2b   :  { %3384 = vmatpush3.msra.mxu0 %v199_v42 }
 0xd2c   :  { %3385 = vmatprep.subr.mxu0 %v5012_v49 }
 0xd2d   :  { %3386 = vmatpush3.msra.mxu0 %v198_v43 }
 0xd2e   :  { %3387 = vmatprep.subr.mxu0 %v5012_v49 }
 0xd2f   :  { %3388 = vmatpush3.msra.mxu0 %v197_v45 }
 0xd30   :  { %3389 = vmatprep.subr.mxu0 %v5012_v49 }
 0xd31   :  { %3390 = vmatpush3.msra.mxu0 %v196_v46 }
 0xd32   :  { %3391 = vmatprep.subr.mxu0 %v5012_v49 }
 0xd33   :  { %3392 = vmatpush3.msra.mxu0 %v195_v47 }
 0xd34   :  { %3393 = vmatprep.subr.mxu0 %v5012_v49 }
 0xd35   :  { %3394 = vmatpush3.msra.mxu0 %v194_v48 }
 0xd36   :  { %3395 = vmatprep.subr.mxu0 %v5012_v49 }
 0xd37   :  { %3396 = vmatpush3.msra.mxu0 %v193_v7 }
 0xd38   :  { %3397 = vmatprep.subr.mxu0 %v5012_v49 }
 0xd39   :  { %3398 = vmatpush3.msra.mxu0 %v192_v8 }
 0xd3a   :  { %3437 = vmatprep.subr.mxu0 %v5012_v49 }
 0xdda   :  { %v1916_v1 = vpop.f32.mrf.mxu0 }
 0xddb   :  { %v1917_v54 = vadd.f32 %v3633_v32, %v1916_v1 }
 0xddc   :  { %v3331_v58 = vpop.f32.mrf.mxu0 }
 0xddd   :  { %v1920_v6 = vmax.f32 %v1917_v54, 0.0 }
 0xddf   :  { %3365 = vmatmul.mubr.f32.vlgmr.msra.gmra.mxu1 %v1920_v6 }
 0xde0   :  { %3434 = vmatprep.mubr.msk.f32.mxu1 %vm3686_vm0, %v5012_v49  ;;  %3403 = vmatpush3.msra.mxu1 %v223_v9 }
 0xde1   :  { %3404 = vmatprep.subr.mxu1 %v5012_v49 }
 0xde2   :  { %3405 = vmatpush3.msra.mxu1 %v222_v10 }
 0xde3   :  { %3406 = vmatprep.subr.mxu1 %v5012_v49 }
 0xde4   :  { %3407 = vmatpush3.msra.mxu1 %v221_v12 }
 0xde5   :  { %3408 = vmatprep.subr.mxu1 %v5012_v49 }
 0xde6   :  { %3409 = vmatpush3.msra.mxu1 %v220_v13 }
 0xde7   :  { %3410 = vmatprep.subr.mxu1 %v5012_v49 }
 0xde8   :  { %3411 = vmatpush3.msra.mxu1 %v219_v14 }
 0xde9   :  { %3412 = vmatprep.subr.mxu1 %v5012_v49 }
 0xdea   :  { %3413 = vmatpush3.msra.mxu1 %v218_v15 }
 0xdeb   :  { %3414 = vmatprep.subr.mxu1 %v5012_v49 }
 0xdec   :  { %3415 = vmatpush3.msra.mxu1 %v217_v16 }
 0xded   :  { %3416 = vmatprep.subr.mxu1 %v5012_v49 }
 0xdee   :  { %3417 = vmatpush3.msra.mxu1 %v216_v17 }
 0xdef   :  { %3418 = vmatprep.subr.mxu1 %v5012_v49 }
 0xdf0   :  { %3419 = vmatpush3.msra.mxu1 %v215_v18 }
 0xdf1   :  { %3420 = vmatprep.subr.mxu1 %v5012_v49 }
 0xdf2   :  { %3421 = vmatpush3.msra.mxu1 %v214_v19 }
 0xdf3   :  { %3422 = vmatprep.subr.mxu1 %v5012_v49 }
 0xdf4   :  { %3423 = vmatpush3.msra.mxu1 %v213_v57 }
 0xdf5   :  { %3424 = vmatprep.subr.mxu1 %v5012_v49 }
 0xdf6   :  { %3425 = vmatpush3.msra.mxu1 %v212_v20 }
 0xdf7   :  { %3426 = vmatprep.subr.mxu1 %v5012_v49 }
 0xdf8   :  { %3427 = vmatpush3.msra.mxu1 %v211_v21 }
 0xdf9   :  { %3428 = vmatprep.subr.mxu1 %v5012_v49 }
 0xdfa   :  { %3429 = vmatpush3.msra.mxu1 %v210_v26 }
 0xdfb   :  { %3430 = vmatprep.subr.mxu1 %v5012_v49 }
 0xdfc   :  { %3431 = vmatpush3.msra.mxu1 %v209_v27 }
 0xdfd   :  { %3432 = vmatprep.subr.mxu1 %v5012_v49 }
 0xdfe   :  { %3433 = vmatpush3.msra.mxu1 %v208_v5 }
 0xe9f   :  { %v1987_v22 = vpop.f32.mrf.mxu1 }
 0xea0   :  { %v1988_v24 = vadd.f32 %v3634_v23, %v1987_v22 }
 0xea1   :  { %v3366_v25 = vpop.f32.mrf.mxu1 }
 0xea2   :  { %3400 = vmatmul.mubr.f32.vlgmr.msra.gmra.mxu0 %v1988_v24 }
 0xea3   :  { %3469 = vmatprep.mubr.msk.f32.mxu0 %vm3686_vm0, %v5012_v49  ;;  %3438 = vmatpush3.msra.mxu0 %v239_v28 }
 0xea4   :  { %3439 = vmatprep.subr.mxu0 %v5012_v49 }
 0xea5   :  { %3440 = vmatpush3.msra.mxu0 %v238_v29 }
 0xea6   :  { %3441 = vmatprep.subr.mxu0 %v5012_v49 }
 0xea7   :  { %3442 = vmatpush3.msra.mxu0 %v237_v30 }
 0xea8   :  { %3443 = vmatprep.subr.mxu0 %v5012_v49 }
 0xea9   :  { %3444 = vmatpush3.msra.mxu0 %v236_v56 }
 0xeaa   :  { %3445 = vmatprep.subr.mxu0 %v5012_v49 }
 0xeab   :  { %3446 = vmatpush3.msra.mxu0 %v235_v31 }
 0xeac   :  { %3447 = vmatprep.subr.mxu0 %v5012_v49 }
 0xead   :  { %3448 = vmatpush3.msra.mxu0 %v234_v33 }
 0xeae   :  { %3449 = vmatprep.subr.mxu0 %v5012_v49 }
 0xeaf   :  { %3450 = vmatpush3.msra.mxu0 %v233_v60 }
 0xeb0   :  { %3451 = vmatprep.subr.mxu0 %v5012_v49 }
 0xeb1   :  { %3452 = vmatpush3.msra.mxu0 %v232_v34 }
 0xeb2   :  { %3453 = vmatprep.subr.mxu0 %v5012_v49 }
 0xeb3   :  { %3454 = vmatpush3.msra.mxu0 %v231_v35 }
 0xeb4   :  { %3455 = vmatprep.subr.mxu0 %v5012_v49 }
 0xeb5   :  { %3456 = vmatpush3.msra.mxu0 %v230_v36 }
 0xeb6   :  { %3457 = vmatprep.subr.mxu0 %v5012_v49 }
 0xeb7   :  { %3458 = vmatpush3.msra.mxu0 %v229_v0 }
 0xeb8   :  { %3459 = vmatprep.subr.mxu0 %v5012_v49 }
 0xeb9   :  { %3460 = vmatpush3.msra.mxu0 %v228_v55 }
 0xeba   :  { %3461 = vmatprep.subr.mxu0 %v5012_v49 }
 0xebb   :  { %3462 = vmatpush3.msra.mxu0 %v227_v53 }
 0xebc   :  { %3463 = vmatprep.subr.mxu0 %v5012_v49 }
 0xebd   :  { %3464 = vmatpush3.msra.mxu0 %v226_v11 }
 0xebe   :  { %3465 = vmatprep.subr.mxu0 %v5012_v49 }
 0xebf   :  { %3466 = vmatpush3.msra.mxu0 %v225_v61 }
 0xec0   :  { %3467 = vmatprep.subr.mxu0 %v5012_v49 }
 0xec1   :  { %3468 = vmatpush3.msra.mxu0 %v224_v37 }
 0xf62   :  { %v2063_v51 = vpop.f32.mrf.mxu0 }
 0xf63   :  { %v2064_v52 = vadd.f32 %v2222_v50, %v2063_v51 }
 0xf64   :  { %v3401_v62 = vpop.f32.mrf.mxu0 }
 0xf65   :  { %v2067_v63 = vmax.f32 %v2064_v52, 0.0 }
 0xf67   :  { %3435 = vmatmul.mubr.f32.vlgmr.msra.gmra.mxu1 %v2067_v63 }
0x1027   :  { %v2134_v2 = vpop.f32.mrf.mxu1 }
0x1028   :  { %v2135_v38 = vadd.f32 %v2134_v2, %v259_v44 }
0x1029   :  { %v3436_v3 = vpop.f32.mrf.mxu1 }
0x102a   :  { %v2138_v39 = vmax.f32 %v2135_v38, 0.0 }
0x102c   :  { %3470 = vmatmul.mubr.f32.vlgmr.msra.gmra.mxu0 %v2138_v39 }
0x10ec   :  { %v2205_v40 = vpop.f32.mrf.mxu0 }
0x10ed   :  { %v2206_v59 = vadd.f32 %v2205_v40, %v260_v4 }
0x10ee   :  { %v3471_v41 = vpop.f32.mrf.mxu0 }
0x10ef   :  { %v2223_v42 = vmul.f32 -1.442695, %v2206_v59 }
0x10f1   :  { %3480 = vpow2.f32 %v2223_v42 }
0x10fe   :  { %v3481_v49 = vpop.eup %3480 }
0x10ff   :  { %v2212_v43 = vadd.f32 1.0, %v3481_v49 }
0x1101   :  { %3482 = vrcp.f32 %v2212_v43 }
0x110e   :  { %v3483_v45 = vpop.eup %3482 }
0x110f   :  { %2215 = vst [vmem:[%s4837_s5] sm:$0xff] %v3483_v45 }
0x1110   :  { %2220 = vsyncpa [#allocation3], 1 }
0x1111   :  { %2221 = vsyncpa [#allocation5], 1 }

</bundles_post_ra>
